<compile_context>
chip_gen: v7x
topology: tpu7x:2x2x1
jax: 0.10.0
libtpu: 0.0.40
codegen_flags: <defaults>
</compile_context>

<pallas_src>
import functools

import jax
import jax.numpy as jnp
from jax import lax
from jax.experimental import pallas as pl
from jax.experimental.pallas import tpu as pltpu


def _make_conv_kernel(n, c_in, c_out, kh, kw, stride, oh, ow):
    s = stride

    def kernel(x_ref, w_ref, b_ref, o_ref):
        # x_ref: (N, C_in*s*s, HQ, WQ) phase planes in VMEM
        # w_ref: (C_out*C_in*KH*KW,) f32 scalars in SMEM (OIHW row-major)
        # b_ref: (C_out,) f32 in SMEM
        # o_ref: (N, C_out, OH, OW) f32 in VMEM (already NCHW; no post-transpose)
        for bi in range(n):
            # Start each accumulator at its bias (saves a separate add pass).
            accs = [jnp.full((oh, ow), b_ref[co], jnp.float32) for co in range(c_out)]
            for ci in range(c_in):
                for i in range(kh):
                    qi, ri = i // s, i % s
                    for j in range(kw):
                        qj, rj = j // s, j % s
                        ph = (ci * s + ri) * s + rj
                        # Contiguous (OH, OW) tap plane; loaded once and reused
                        # for every output channel (VPU broadcast-MAC, no MXU).
                        tap = x_ref[bi, ph, pl.ds(qi, oh), pl.ds(qj, ow)]
                        for co in range(c_out):
                            wv = w_ref[((co * c_in + ci) * kh + i) * kw + j]
                            accs[co] = accs[co] + wv * tap
            for co in range(c_out):
                o_ref[bi, co, :, :] = accs[co].astype(o_ref.dtype)

    return kernel


@functools.partial(jax.jit, static_argnames=("stride", "pad"))
def conv2d_pallas(x, weight, bias, *, stride=2, pad=1):
    """x: (N, C_in, H, W) NCHW f32.  weight: (C_out, C_in, KH, KW) OIHW.  bias: (C_out,)."""
    n, c_in, h, w = x.shape
    c_out, c_in_w, kh, kw = weight.shape
    assert c_in == c_in_w
    s = stride
    oh = (h + 2 * pad - kh) // s + 1
    ow = (w + 2 * pad - kw) // s + 1

    # Space-to-depth (phase) layout: stride-s sampling becomes contiguous slicing.
    hq = max(-(-(h + 2 * pad) // s), (kh - 1) // s + oh)
    wq = max(-(-(w + 2 * pad) // s), (kw - 1) // s + ow)
    xpad = jnp.pad(
        x.astype(jnp.float32),
        ((0, 0), (0, 0), (pad, hq * s - h - pad), (pad, wq * s - w - pad)),
    )
    xph = (
        xpad.reshape(n, c_in, hq, s, wq, s)
        .transpose(0, 1, 3, 5, 2, 4)
        .reshape(n, c_in * s * s, hq, wq)
    )
    w_flat = weight.astype(jnp.float32).reshape(-1)  # [co, ci, i, j] row-major
    b_vec = bias.astype(jnp.float32)

    kernel = _make_conv_kernel(n, c_in, c_out, kh, kw, s, oh, ow)
    out = pl.pallas_call(
        kernel,
        out_shape=jax.ShapeDtypeStruct((n, c_out, oh, ow), jnp.float32),
        in_specs=[
            pl.BlockSpec(memory_space=pltpu.MemorySpace.VMEM),
            pl.BlockSpec(memory_space=pltpu.MemorySpace.SMEM),
            pl.BlockSpec(memory_space=pltpu.MemorySpace.SMEM),
        ],
        out_specs=pl.BlockSpec(memory_space=pltpu.MemorySpace.VMEM),
    )(xph, w_flat, b_vec)
    return out


if __name__ == "__main__":
    key = jax.random.PRNGKey(0)
    kx, kwt, kb = jax.random.split(key, 3)

    # Module input shape: (1, 3, 64, 64), NCHW (PyTorch convention).
    x = jax.random.normal(kx, (1, 3, 64, 64), jnp.float32)

    # Deterministic parameter init for Conv2d(3, 3, 3): weight (3,3,3,3) OIHW, bias (3,).
    fan_in = 3 * 3 * 3
    bound = 1.0 / (fan_in ** 0.5)
    weight = jax.random.uniform(kwt, (3, 3, 3, 3), jnp.float32, -bound, bound)
    bias = jax.random.uniform(kb, (3,), jnp.float32, -bound, bound)

    out = conv2d_pallas(x, weight, bias, stride=2, pad=1)
    out = jax.block_until_ready(out)
    assert out.shape == (1, 3, 32, 32), out.shape

    # Cross-check against XLA's conv for correctness.
    ref = lax.conv_general_dilated(
        x, weight, window_strides=(2, 2), padding=((1, 1), (1, 1)),
        dimension_numbers=("NCHW", "OIHW", "NCHW")) + bias.reshape(1, 3, 1, 1)
    assert jnp.allclose(out, ref, atol=1e-4, rtol=1e-4), float(jnp.max(jnp.abs(out - ref)))

    print("KERNEL_OK")
</pallas_src>

<mosaic_0001>
module attributes {stable_mosaic.version = 11 : i64} {
  func.func @kernel(%arg0: memref<1x12x33x33xf32, #tpu.memory_space<vmem>>, %arg1: memref<81xf32, #tpu.memory_space<smem>>, %arg2: memref<3xf32, #tpu.memory_space<smem>>, %arg3: memref<1x3x32x32xf32, #tpu.memory_space<vmem>>) attributes {dimension_semantics = [], scalar_prefetch = 0 : i64, scratch_operands = 0 : i64, tpu.core_type = #tpu.core_type<tc>} {
    %c0 = arith.constant 0 : index
    %0 = memref.load %arg2[%c0] : memref<3xf32, #tpu.memory_space<smem>>
    %1 = vector.broadcast %0 : f32 to vector<32x32xf32>
    %c1 = arith.constant 1 : index
    %2 = memref.load %arg2[%c1] : memref<3xf32, #tpu.memory_space<smem>>
    %3 = vector.broadcast %2 : f32 to vector<32x32xf32>
    %c2 = arith.constant 2 : index
    %4 = memref.load %arg2[%c2] : memref<3xf32, #tpu.memory_space<smem>>
    %5 = vector.broadcast %4 : f32 to vector<32x32xf32>
    %c0_0 = arith.constant 0 : index
    %c0_1 = arith.constant 0 : index
    %c0_2 = arith.constant 0 : index
    %c0_3 = arith.constant 0 : index
    %6 = vector.load %arg0[%c0_0, %c0_1, %c0_2, %c0_3] : memref<1x12x33x33xf32, #tpu.memory_space<vmem>>, vector<1x1x32x32xf32>
    %7 = vector.shape_cast %6 : vector<1x1x32x32xf32> to vector<32x32xf32>
    %c0_4 = arith.constant 0 : index
    %8 = memref.load %arg1[%c0_4] : memref<81xf32, #tpu.memory_space<smem>>
    %9 = vector.broadcast %8 : f32 to vector<32x32xf32>
    %10 = arith.mulf %9, %7 : vector<32x32xf32>
    %11 = arith.addf %1, %10 : vector<32x32xf32>
    %c27 = arith.constant 27 : index
    %12 = memref.load %arg1[%c27] : memref<81xf32, #tpu.memory_space<smem>>
    %13 = vector.broadcast %12 : f32 to vector<32x32xf32>
    %14 = arith.mulf %13, %7 : vector<32x32xf32>
    %15 = arith.addf %3, %14 : vector<32x32xf32>
    %c54 = arith.constant 54 : index
    %16 = memref.load %arg1[%c54] : memref<81xf32, #tpu.memory_space<smem>>
    %17 = vector.broadcast %16 : f32 to vector<32x32xf32>
    %18 = arith.mulf %17, %7 : vector<32x32xf32>
    %19 = arith.addf %5, %18 : vector<32x32xf32>
    %c0_5 = arith.constant 0 : index
    %c1_6 = arith.constant 1 : index
    %c0_7 = arith.constant 0 : index
    %c0_8 = arith.constant 0 : index
    %20 = vector.load %arg0[%c0_5, %c1_6, %c0_7, %c0_8] : memref<1x12x33x33xf32, #tpu.memory_space<vmem>>, vector<1x1x32x32xf32>
    %21 = vector.shape_cast %20 : vector<1x1x32x32xf32> to vector<32x32xf32>
    %c1_9 = arith.constant 1 : index
    %22 = memref.load %arg1[%c1_9] : memref<81xf32, #tpu.memory_space<smem>>
    %23 = vector.broadcast %22 : f32 to vector<32x32xf32>
    %24 = arith.mulf %23, %21 : vector<32x32xf32>
    %25 = arith.addf %11, %24 : vector<32x32xf32>
    %c28 = arith.constant 28 : index
    %26 = memref.load %arg1[%c28] : memref<81xf32, #tpu.memory_space<smem>>
    %27 = vector.broadcast %26 : f32 to vector<32x32xf32>
    %28 = arith.mulf %27, %21 : vector<32x32xf32>
    %29 = arith.addf %15, %28 : vector<32x32xf32>
    %c55 = arith.constant 55 : index
    %30 = memref.load %arg1[%c55] : memref<81xf32, #tpu.memory_space<smem>>
    %31 = vector.broadcast %30 : f32 to vector<32x32xf32>
    %32 = arith.mulf %31, %21 : vector<32x32xf32>
    %33 = arith.addf %19, %32 : vector<32x32xf32>
    %c0_10 = arith.constant 0 : index
    %c0_11 = arith.constant 0 : index
    %c0_12 = arith.constant 0 : index
    %c1_13 = arith.constant 1 : index
    %34 = vector.load %arg0[%c0_10, %c0_11, %c0_12, %c1_13] : memref<1x12x33x33xf32, #tpu.memory_space<vmem>>, vector<1x1x32x32xf32>
    %35 = vector.shape_cast %34 : vector<1x1x32x32xf32> to vector<32x32xf32>
    %c2_14 = arith.constant 2 : index
    %36 = memref.load %arg1[%c2_14] : memref<81xf32, #tpu.memory_space<smem>>
    %37 = vector.broadcast %36 : f32 to vector<32x32xf32>
    %38 = arith.mulf %37, %35 : vector<32x32xf32>
    %39 = arith.addf %25, %38 : vector<32x32xf32>
    %c29 = arith.constant 29 : index
    %40 = memref.load %arg1[%c29] : memref<81xf32, #tpu.memory_space<smem>>
    %41 = vector.broadcast %40 : f32 to vector<32x32xf32>
    %42 = arith.mulf %41, %35 : vector<32x32xf32>
    %43 = arith.addf %29, %42 : vector<32x32xf32>
    %c56 = arith.constant 56 : index
    %44 = memref.load %arg1[%c56] : memref<81xf32, #tpu.memory_space<smem>>
    %45 = vector.broadcast %44 : f32 to vector<32x32xf32>
    %46 = arith.mulf %45, %35 : vector<32x32xf32>
    %47 = arith.addf %33, %46 : vector<32x32xf32>
    %c0_15 = arith.constant 0 : index
    %c2_16 = arith.constant 2 : index
    %c0_17 = arith.constant 0 : index
    %c0_18 = arith.constant 0 : index
    %48 = vector.load %arg0[%c0_15, %c2_16, %c0_17, %c0_18] : memref<1x12x33x33xf32, #tpu.memory_space<vmem>>, vector<1x1x32x32xf32>
    %49 = vector.shape_cast %48 : vector<1x1x32x32xf32> to vector<32x32xf32>
    %c3 = arith.constant 3 : index
    %50 = memref.load %arg1[%c3] : memref<81xf32, #tpu.memory_space<smem>>
    %51 = vector.broadcast %50 : f32 to vector<32x32xf32>
    %52 = arith.mulf %51, %49 : vector<32x32xf32>
    %53 = arith.addf %39, %52 : vector<32x32xf32>
    %c30 = arith.constant 30 : index
    %54 = memref.load %arg1[%c30] : memref<81xf32, #tpu.memory_space<smem>>
    %55 = vector.broadcast %54 : f32 to vector<32x32xf32>
    %56 = arith.mulf %55, %49 : vector<32x32xf32>
    %57 = arith.addf %43, %56 : vector<32x32xf32>
    %c57 = arith.constant 57 : index
    %58 = memref.load %arg1[%c57] : memref<81xf32, #tpu.memory_space<smem>>
    %59 = vector.broadcast %58 : f32 to vector<32x32xf32>
    %60 = arith.mulf %59, %49 : vector<32x32xf32>
    %61 = arith.addf %47, %60 : vector<32x32xf32>
    %c0_19 = arith.constant 0 : index
    %c3_20 = arith.constant 3 : index
    %c0_21 = arith.constant 0 : index
    %c0_22 = arith.constant 0 : index
    %62 = vector.load %arg0[%c0_19, %c3_20, %c0_21, %c0_22] : memref<1x12x33x33xf32, #tpu.memory_space<vmem>>, vector<1x1x32x32xf32>
    %63 = vector.shape_cast %62 : vector<1x1x32x32xf32> to vector<32x32xf32>
    %c4 = arith.constant 4 : index
    %64 = memref.load %arg1[%c4] : memref<81xf32, #tpu.memory_space<smem>>
    %65 = vector.broadcast %64 : f32 to vector<32x32xf32>
    %66 = arith.mulf %65, %63 : vector<32x32xf32>
    %67 = arith.addf %53, %66 : vector<32x32xf32>
    %c31 = arith.constant 31 : index
    %68 = memref.load %arg1[%c31] : memref<81xf32, #tpu.memory_space<smem>>
    %69 = vector.broadcast %68 : f32 to vector<32x32xf32>
    %70 = arith.mulf %69, %63 : vector<32x32xf32>
    %71 = arith.addf %57, %70 : vector<32x32xf32>
    %c58 = arith.constant 58 : index
    %72 = memref.load %arg1[%c58] : memref<81xf32, #tpu.memory_space<smem>>
    %73 = vector.broadcast %72 : f32 to vector<32x32xf32>
    %74 = arith.mulf %73, %63 : vector<32x32xf32>
    %75 = arith.addf %61, %74 : vector<32x32xf32>
    %c0_23 = arith.constant 0 : index
    %c2_24 = arith.constant 2 : index
    %c0_25 = arith.constant 0 : index
    %c1_26 = arith.constant 1 : index
    %76 = vector.load %arg0[%c0_23, %c2_24, %c0_25, %c1_26] : memref<1x12x33x33xf32, #tpu.memory_space<vmem>>, vector<1x1x32x32xf32>
    %77 = vector.shape_cast %76 : vector<1x1x32x32xf32> to vector<32x32xf32>
    %c5 = arith.constant 5 : index
    %78 = memref.load %arg1[%c5] : memref<81xf32, #tpu.memory_space<smem>>
    %79 = vector.broadcast %78 : f32 to vector<32x32xf32>
    %80 = arith.mulf %79, %77 : vector<32x32xf32>
    %81 = arith.addf %67, %80 : vector<32x32xf32>
    %c32 = arith.constant 32 : index
    %82 = memref.load %arg1[%c32] : memref<81xf32, #tpu.memory_space<smem>>
    %83 = vector.broadcast %82 : f32 to vector<32x32xf32>
    %84 = arith.mulf %83, %77 : vector<32x32xf32>
    %85 = arith.addf %71, %84 : vector<32x32xf32>
    %c59 = arith.constant 59 : index
    %86 = memref.load %arg1[%c59] : memref<81xf32, #tpu.memory_space<smem>>
    %87 = vector.broadcast %86 : f32 to vector<32x32xf32>
    %88 = arith.mulf %87, %77 : vector<32x32xf32>
    %89 = arith.addf %75, %88 : vector<32x32xf32>
    %c0_27 = arith.constant 0 : index
    %c0_28 = arith.constant 0 : index
    %c1_29 = arith.constant 1 : index
    %c0_30 = arith.constant 0 : index
    %90 = vector.load %arg0[%c0_27, %c0_28, %c1_29, %c0_30] : memref<1x12x33x33xf32, #tpu.memory_space<vmem>>, vector<1x1x32x32xf32>
    %91 = vector.shape_cast %90 : vector<1x1x32x32xf32> to vector<32x32xf32>
    %c6 = arith.constant 6 : index
    %92 = memref.load %arg1[%c6] : memref<81xf32, #tpu.memory_space<smem>>
    %93 = vector.broadcast %92 : f32 to vector<32x32xf32>
    %94 = arith.mulf %93, %91 : vector<32x32xf32>
    %95 = arith.addf %81, %94 : vector<32x32xf32>
    %c33 = arith.constant 33 : index
    %96 = memref.load %arg1[%c33] : memref<81xf32, #tpu.memory_space<smem>>
    %97 = vector.broadcast %96 : f32 to vector<32x32xf32>
    %98 = arith.mulf %97, %91 : vector<32x32xf32>
    %99 = arith.addf %85, %98 : vector<32x32xf32>
    %c60 = arith.constant 60 : index
    %100 = memref.load %arg1[%c60] : memref<81xf32, #tpu.memory_space<smem>>
    %101 = vector.broadcast %100 : f32 to vector<32x32xf32>
    %102 = arith.mulf %101, %91 : vector<32x32xf32>
    %103 = arith.addf %89, %102 : vector<32x32xf32>
    %c0_31 = arith.constant 0 : index
    %c1_32 = arith.constant 1 : index
    %c1_33 = arith.constant 1 : index
    %c0_34 = arith.constant 0 : index
    %104 = vector.load %arg0[%c0_31, %c1_32, %c1_33, %c0_34] : memref<1x12x33x33xf32, #tpu.memory_space<vmem>>, vector<1x1x32x32xf32>
    %105 = vector.shape_cast %104 : vector<1x1x32x32xf32> to vector<32x32xf32>
    %c7 = arith.constant 7 : index
    %106 = memref.load %arg1[%c7] : memref<81xf32, #tpu.memory_space<smem>>
    %107 = vector.broadcast %106 : f32 to vector<32x32xf32>
    %108 = arith.mulf %107, %105 : vector<32x32xf32>
    %109 = arith.addf %95, %108 : vector<32x32xf32>
    %c34 = arith.constant 34 : index
    %110 = memref.load %arg1[%c34] : memref<81xf32, #tpu.memory_space<smem>>
    %111 = vector.broadcast %110 : f32 to vector<32x32xf32>
    %112 = arith.mulf %111, %105 : vector<32x32xf32>
    %113 = arith.addf %99, %112 : vector<32x32xf32>
    %c61 = arith.constant 61 : index
    %114 = memref.load %arg1[%c61] : memref<81xf32, #tpu.memory_space<smem>>
    %115 = vector.broadcast %114 : f32 to vector<32x32xf32>
    %116 = arith.mulf %115, %105 : vector<32x32xf32>
    %117 = arith.addf %103, %116 : vector<32x32xf32>
    %c0_35 = arith.constant 0 : index
    %c0_36 = arith.constant 0 : index
    %c1_37 = arith.constant 1 : index
    %c1_38 = arith.constant 1 : index
    %118 = vector.load %arg0[%c0_35, %c0_36, %c1_37, %c1_38] : memref<1x12x33x33xf32, #tpu.memory_space<vmem>>, vector<1x1x32x32xf32>
    %119 = vector.shape_cast %118 : vector<1x1x32x32xf32> to vector<32x32xf32>
    %c8 = arith.constant 8 : index
    %120 = memref.load %arg1[%c8] : memref<81xf32, #tpu.memory_space<smem>>
    %121 = vector.broadcast %120 : f32 to vector<32x32xf32>
    %122 = arith.mulf %121, %119 : vector<32x32xf32>
    %123 = arith.addf %109, %122 : vector<32x32xf32>
    %c35 = arith.constant 35 : index
    %124 = memref.load %arg1[%c35] : memref<81xf32, #tpu.memory_space<smem>>
    %125 = vector.broadcast %124 : f32 to vector<32x32xf32>
    %126 = arith.mulf %125, %119 : vector<32x32xf32>
    %127 = arith.addf %113, %126 : vector<32x32xf32>
    %c62 = arith.constant 62 : index
    %128 = memref.load %arg1[%c62] : memref<81xf32, #tpu.memory_space<smem>>
    %129 = vector.broadcast %128 : f32 to vector<32x32xf32>
    %130 = arith.mulf %129, %119 : vector<32x32xf32>
    %131 = arith.addf %117, %130 : vector<32x32xf32>
    %c0_39 = arith.constant 0 : index
    %c4_40 = arith.constant 4 : index
    %c0_41 = arith.constant 0 : index
    %c0_42 = arith.constant 0 : index
    %132 = vector.load %arg0[%c0_39, %c4_40, %c0_41, %c0_42] : memref<1x12x33x33xf32, #tpu.memory_space<vmem>>, vector<1x1x32x32xf32>
    %133 = vector.shape_cast %132 : vector<1x1x32x32xf32> to vector<32x32xf32>
    %c9 = arith.constant 9 : index
    %134 = memref.load %arg1[%c9] : memref<81xf32, #tpu.memory_space<smem>>
    %135 = vector.broadcast %134 : f32 to vector<32x32xf32>
    %136 = arith.mulf %135, %133 : vector<32x32xf32>
    %137 = arith.addf %123, %136 : vector<32x32xf32>
    %c36 = arith.constant 36 : index
    %138 = memref.load %arg1[%c36] : memref<81xf32, #tpu.memory_space<smem>>
    %139 = vector.broadcast %138 : f32 to vector<32x32xf32>
    %140 = arith.mulf %139, %133 : vector<32x32xf32>
    %141 = arith.addf %127, %140 : vector<32x32xf32>
    %c63 = arith.constant 63 : index
    %142 = memref.load %arg1[%c63] : memref<81xf32, #tpu.memory_space<smem>>
    %143 = vector.broadcast %142 : f32 to vector<32x32xf32>
    %144 = arith.mulf %143, %133 : vector<32x32xf32>
    %145 = arith.addf %131, %144 : vector<32x32xf32>
    %c0_43 = arith.constant 0 : index
    %c5_44 = arith.constant 5 : index
    %c0_45 = arith.constant 0 : index
    %c0_46 = arith.constant 0 : index
    %146 = vector.load %arg0[%c0_43, %c5_44, %c0_45, %c0_46] : memref<1x12x33x33xf32, #tpu.memory_space<vmem>>, vector<1x1x32x32xf32>
    %147 = vector.shape_cast %146 : vector<1x1x32x32xf32> to vector<32x32xf32>
    %c10 = arith.constant 10 : index
    %148 = memref.load %arg1[%c10] : memref<81xf32, #tpu.memory_space<smem>>
    %149 = vector.broadcast %148 : f32 to vector<32x32xf32>
    %150 = arith.mulf %149, %147 : vector<32x32xf32>
    %151 = arith.addf %137, %150 : vector<32x32xf32>
    %c37 = arith.constant 37 : index
    %152 = memref.load %arg1[%c37] : memref<81xf32, #tpu.memory_space<smem>>
    %153 = vector.broadcast %152 : f32 to vector<32x32xf32>
    %154 = arith.mulf %153, %147 : vector<32x32xf32>
    %155 = arith.addf %141, %154 : vector<32x32xf32>
    %c64 = arith.constant 64 : index
    %156 = memref.load %arg1[%c64] : memref<81xf32, #tpu.memory_space<smem>>
    %157 = vector.broadcast %156 : f32 to vector<32x32xf32>
    %158 = arith.mulf %157, %147 : vector<32x32xf32>
    %159 = arith.addf %145, %158 : vector<32x32xf32>
    %c0_47 = arith.constant 0 : index
    %c4_48 = arith.constant 4 : index
    %c0_49 = arith.constant 0 : index
    %c1_50 = arith.constant 1 : index
    %160 = vector.load %arg0[%c0_47, %c4_48, %c0_49, %c1_50] : memref<1x12x33x33xf32, #tpu.memory_space<vmem>>, vector<1x1x32x32xf32>
    %161 = vector.shape_cast %160 : vector<1x1x32x32xf32> to vector<32x32xf32>
    %c11 = arith.constant 11 : index
    %162 = memref.load %arg1[%c11] : memref<81xf32, #tpu.memory_space<smem>>
    %163 = vector.broadcast %162 : f32 to vector<32x32xf32>
    %164 = arith.mulf %163, %161 : vector<32x32xf32>
    %165 = arith.addf %151, %164 : vector<32x32xf32>
    %c38 = arith.constant 38 : index
    %166 = memref.load %arg1[%c38] : memref<81xf32, #tpu.memory_space<smem>>
    %167 = vector.broadcast %166 : f32 to vector<32x32xf32>
    %168 = arith.mulf %167, %161 : vector<32x32xf32>
    %169 = arith.addf %155, %168 : vector<32x32xf32>
    %c65 = arith.constant 65 : index
    %170 = memref.load %arg1[%c65] : memref<81xf32, #tpu.memory_space<smem>>
    %171 = vector.broadcast %170 : f32 to vector<32x32xf32>
    %172 = arith.mulf %171, %161 : vector<32x32xf32>
    %173 = arith.addf %159, %172 : vector<32x32xf32>
    %c0_51 = arith.constant 0 : index
    %c6_52 = arith.constant 6 : index
    %c0_53 = arith.constant 0 : index
    %c0_54 = arith.constant 0 : index
    %174 = vector.load %arg0[%c0_51, %c6_52, %c0_53, %c0_54] : memref<1x12x33x33xf32, #tpu.memory_space<vmem>>, vector<1x1x32x32xf32>
    %175 = vector.shape_cast %174 : vector<1x1x32x32xf32> to vector<32x32xf32>
    %c12 = arith.constant 12 : index
    %176 = memref.load %arg1[%c12] : memref<81xf32, #tpu.memory_space<smem>>
    %177 = vector.broadcast %176 : f32 to vector<32x32xf32>
    %178 = arith.mulf %177, %175 : vector<32x32xf32>
    %179 = arith.addf %165, %178 : vector<32x32xf32>
    %c39 = arith.constant 39 : index
    %180 = memref.load %arg1[%c39] : memref<81xf32, #tpu.memory_space<smem>>
    %181 = vector.broadcast %180 : f32 to vector<32x32xf32>
    %182 = arith.mulf %181, %175 : vector<32x32xf32>
    %183 = arith.addf %169, %182 : vector<32x32xf32>
    %c66 = arith.constant 66 : index
    %184 = memref.load %arg1[%c66] : memref<81xf32, #tpu.memory_space<smem>>
    %185 = vector.broadcast %184 : f32 to vector<32x32xf32>
    %186 = arith.mulf %185, %175 : vector<32x32xf32>
    %187 = arith.addf %173, %186 : vector<32x32xf32>
    %c0_55 = arith.constant 0 : index
    %c7_56 = arith.constant 7 : index
    %c0_57 = arith.constant 0 : index
    %c0_58 = arith.constant 0 : index
    %188 = vector.load %arg0[%c0_55, %c7_56, %c0_57, %c0_58] : memref<1x12x33x33xf32, #tpu.memory_space<vmem>>, vector<1x1x32x32xf32>
    %189 = vector.shape_cast %188 : vector<1x1x32x32xf32> to vector<32x32xf32>
    %c13 = arith.constant 13 : index
    %190 = memref.load %arg1[%c13] : memref<81xf32, #tpu.memory_space<smem>>
    %191 = vector.broadcast %190 : f32 to vector<32x32xf32>
    %192 = arith.mulf %191, %189 : vector<32x32xf32>
    %193 = arith.addf %179, %192 : vector<32x32xf32>
    %c40 = arith.constant 40 : index
    %194 = memref.load %arg1[%c40] : memref<81xf32, #tpu.memory_space<smem>>
    %195 = vector.broadcast %194 : f32 to vector<32x32xf32>
    %196 = arith.mulf %195, %189 : vector<32x32xf32>
    %197 = arith.addf %183, %196 : vector<32x32xf32>
    %c67 = arith.constant 67 : index
    %198 = memref.load %arg1[%c67] : memref<81xf32, #tpu.memory_space<smem>>
    %199 = vector.broadcast %198 : f32 to vector<32x32xf32>
    %200 = arith.mulf %199, %189 : vector<32x32xf32>
    %201 = arith.addf %187, %200 : vector<32x32xf32>
    %c0_59 = arith.constant 0 : index
    %c6_60 = arith.constant 6 : index
    %c0_61 = arith.constant 0 : index
    %c1_62 = arith.constant 1 : index
    %202 = vector.load %arg0[%c0_59, %c6_60, %c0_61, %c1_62] : memref<1x12x33x33xf32, #tpu.memory_space<vmem>>, vector<1x1x32x32xf32>
    %203 = vector.shape_cast %202 : vector<1x1x32x32xf32> to vector<32x32xf32>
    %c14 = arith.constant 14 : index
    %204 = memref.load %arg1[%c14] : memref<81xf32, #tpu.memory_space<smem>>
    %205 = vector.broadcast %204 : f32 to vector<32x32xf32>
    %206 = arith.mulf %205, %203 : vector<32x32xf32>
    %207 = arith.addf %193, %206 : vector<32x32xf32>
    %c41 = arith.constant 41 : index
    %208 = memref.load %arg1[%c41] : memref<81xf32, #tpu.memory_space<smem>>
    %209 = vector.broadcast %208 : f32 to vector<32x32xf32>
    %210 = arith.mulf %209, %203 : vector<32x32xf32>
    %211 = arith.addf %197, %210 : vector<32x32xf32>
    %c68 = arith.constant 68 : index
    %212 = memref.load %arg1[%c68] : memref<81xf32, #tpu.memory_space<smem>>
    %213 = vector.broadcast %212 : f32 to vector<32x32xf32>
    %214 = arith.mulf %213, %203 : vector<32x32xf32>
    %215 = arith.addf %201, %214 : vector<32x32xf32>
    %c0_63 = arith.constant 0 : index
    %c4_64 = arith.constant 4 : index
    %c1_65 = arith.constant 1 : index
    %c0_66 = arith.constant 0 : index
    %216 = vector.load %arg0[%c0_63, %c4_64, %c1_65, %c0_66] : memref<1x12x33x33xf32, #tpu.memory_space<vmem>>, vector<1x1x32x32xf32>
    %217 = vector.shape_cast %216 : vector<1x1x32x32xf32> to vector<32x32xf32>
    %c15 = arith.constant 15 : index
    %218 = memref.load %arg1[%c15] : memref<81xf32, #tpu.memory_space<smem>>
    %219 = vector.broadcast %218 : f32 to vector<32x32xf32>
    %220 = arith.mulf %219, %217 : vector<32x32xf32>
    %221 = arith.addf %207, %220 : vector<32x32xf32>
    %c42 = arith.constant 42 : index
    %222 = memref.load %arg1[%c42] : memref<81xf32, #tpu.memory_space<smem>>
    %223 = vector.broadcast %222 : f32 to vector<32x32xf32>
    %224 = arith.mulf %223, %217 : vector<32x32xf32>
    %225 = arith.addf %211, %224 : vector<32x32xf32>
    %c69 = arith.constant 69 : index
    %226 = memref.load %arg1[%c69] : memref<81xf32, #tpu.memory_space<smem>>
    %227 = vector.broadcast %226 : f32 to vector<32x32xf32>
    %228 = arith.mulf %227, %217 : vector<32x32xf32>
    %229 = arith.addf %215, %228 : vector<32x32xf32>
    %c0_67 = arith.constant 0 : index
    %c5_68 = arith.constant 5 : index
    %c1_69 = arith.constant 1 : index
    %c0_70 = arith.constant 0 : index
    %230 = vector.load %arg0[%c0_67, %c5_68, %c1_69, %c0_70] : memref<1x12x33x33xf32, #tpu.memory_space<vmem>>, vector<1x1x32x32xf32>
    %231 = vector.shape_cast %230 : vector<1x1x32x32xf32> to vector<32x32xf32>
    %c16 = arith.constant 16 : index
    %232 = memref.load %arg1[%c16] : memref<81xf32, #tpu.memory_space<smem>>
    %233 = vector.broadcast %232 : f32 to vector<32x32xf32>
    %234 = arith.mulf %233, %231 : vector<32x32xf32>
    %235 = arith.addf %221, %234 : vector<32x32xf32>
    %c43 = arith.constant 43 : index
    %236 = memref.load %arg1[%c43] : memref<81xf32, #tpu.memory_space<smem>>
    %237 = vector.broadcast %236 : f32 to vector<32x32xf32>
    %238 = arith.mulf %237, %231 : vector<32x32xf32>
    %239 = arith.addf %225, %238 : vector<32x32xf32>
    %c70 = arith.constant 70 : index
    %240 = memref.load %arg1[%c70] : memref<81xf32, #tpu.memory_space<smem>>
    %241 = vector.broadcast %240 : f32 to vector<32x32xf32>
    %242 = arith.mulf %241, %231 : vector<32x32xf32>
    %243 = arith.addf %229, %242 : vector<32x32xf32>
    %c0_71 = arith.constant 0 : index
    %c4_72 = arith.constant 4 : index
    %c1_73 = arith.constant 1 : index
    %c1_74 = arith.constant 1 : index
    %244 = vector.load %arg0[%c0_71, %c4_72, %c1_73, %c1_74] : memref<1x12x33x33xf32, #tpu.memory_space<vmem>>, vector<1x1x32x32xf32>
    %245 = vector.shape_cast %244 : vector<1x1x32x32xf32> to vector<32x32xf32>
    %c17 = arith.constant 17 : index
    %246 = memref.load %arg1[%c17] : memref<81xf32, #tpu.memory_space<smem>>
    %247 = vector.broadcast %246 : f32 to vector<32x32xf32>
    %248 = arith.mulf %247, %245 : vector<32x32xf32>
    %249 = arith.addf %235, %248 : vector<32x32xf32>
    %c44 = arith.constant 44 : index
    %250 = memref.load %arg1[%c44] : memref<81xf32, #tpu.memory_space<smem>>
    %251 = vector.broadcast %250 : f32 to vector<32x32xf32>
    %252 = arith.mulf %251, %245 : vector<32x32xf32>
    %253 = arith.addf %239, %252 : vector<32x32xf32>
    %c71 = arith.constant 71 : index
    %254 = memref.load %arg1[%c71] : memref<81xf32, #tpu.memory_space<smem>>
    %255 = vector.broadcast %254 : f32 to vector<32x32xf32>
    %256 = arith.mulf %255, %245 : vector<32x32xf32>
    %257 = arith.addf %243, %256 : vector<32x32xf32>
    %c0_75 = arith.constant 0 : index
    %c8_76 = arith.constant 8 : index
    %c0_77 = arith.constant 0 : index
    %c0_78 = arith.constant 0 : index
    %258 = vector.load %arg0[%c0_75, %c8_76, %c0_77, %c0_78] : memref<1x12x33x33xf32, #tpu.memory_space<vmem>>, vector<1x1x32x32xf32>
    %259 = vector.shape_cast %258 : vector<1x1x32x32xf32> to vector<32x32xf32>
    %c18 = arith.constant 18 : index
    %260 = memref.load %arg1[%c18] : memref<81xf32, #tpu.memory_space<smem>>
    %261 = vector.broadcast %260 : f32 to vector<32x32xf32>
    %262 = arith.mulf %261, %259 : vector<32x32xf32>
    %263 = arith.addf %249, %262 : vector<32x32xf32>
    %c45 = arith.constant 45 : index
    %264 = memref.load %arg1[%c45] : memref<81xf32, #tpu.memory_space<smem>>
    %265 = vector.broadcast %264 : f32 to vector<32x32xf32>
    %266 = arith.mulf %265, %259 : vector<32x32xf32>
    %267 = arith.addf %253, %266 : vector<32x32xf32>
    %c72 = arith.constant 72 : index
    %268 = memref.load %arg1[%c72] : memref<81xf32, #tpu.memory_space<smem>>
    %269 = vector.broadcast %268 : f32 to vector<32x32xf32>
    %270 = arith.mulf %269, %259 : vector<32x32xf32>
    %271 = arith.addf %257, %270 : vector<32x32xf32>
    %c0_79 = arith.constant 0 : index
    %c9_80 = arith.constant 9 : index
    %c0_81 = arith.constant 0 : index
    %c0_82 = arith.constant 0 : index
    %272 = vector.load %arg0[%c0_79, %c9_80, %c0_81, %c0_82] : memref<1x12x33x33xf32, #tpu.memory_space<vmem>>, vector<1x1x32x32xf32>
    %273 = vector.shape_cast %272 : vector<1x1x32x32xf32> to vector<32x32xf32>
    %c19 = arith.constant 19 : index
    %274 = memref.load %arg1[%c19] : memref<81xf32, #tpu.memory_space<smem>>
    %275 = vector.broadcast %274 : f32 to vector<32x32xf32>
    %276 = arith.mulf %275, %273 : vector<32x32xf32>
    %277 = arith.addf %263, %276 : vector<32x32xf32>
    %c46 = arith.constant 46 : index
    %278 = memref.load %arg1[%c46] : memref<81xf32, #tpu.memory_space<smem>>
    %279 = vector.broadcast %278 : f32 to vector<32x32xf32>
    %280 = arith.mulf %279, %273 : vector<32x32xf32>
    %281 = arith.addf %267, %280 : vector<32x32xf32>
    %c73 = arith.constant 73 : index
    %282 = memref.load %arg1[%c73] : memref<81xf32, #tpu.memory_space<smem>>
    %283 = vector.broadcast %282 : f32 to vector<32x32xf32>
    %284 = arith.mulf %283, %273 : vector<32x32xf32>
    %285 = arith.addf %271, %284 : vector<32x32xf32>
    %c0_83 = arith.constant 0 : index
    %c8_84 = arith.constant 8 : index
    %c0_85 = arith.constant 0 : index
    %c1_86 = arith.constant 1 : index
    %286 = vector.load %arg0[%c0_83, %c8_84, %c0_85, %c1_86] : memref<1x12x33x33xf32, #tpu.memory_space<vmem>>, vector<1x1x32x32xf32>
    %287 = vector.shape_cast %286 : vector<1x1x32x32xf32> to vector<32x32xf32>
    %c20 = arith.constant 20 : index
    %288 = memref.load %arg1[%c20] : memref<81xf32, #tpu.memory_space<smem>>
    %289 = vector.broadcast %288 : f32 to vector<32x32xf32>
    %290 = arith.mulf %289, %287 : vector<32x32xf32>
    %291 = arith.addf %277, %290 : vector<32x32xf32>
    %c47 = arith.constant 47 : index
    %292 = memref.load %arg1[%c47] : memref<81xf32, #tpu.memory_space<smem>>
    %293 = vector.broadcast %292 : f32 to vector<32x32xf32>
    %294 = arith.mulf %293, %287 : vector<32x32xf32>
    %295 = arith.addf %281, %294 : vector<32x32xf32>
    %c74 = arith.constant 74 : index
    %296 = memref.load %arg1[%c74] : memref<81xf32, #tpu.memory_space<smem>>
    %297 = vector.broadcast %296 : f32 to vector<32x32xf32>
    %298 = arith.mulf %297, %287 : vector<32x32xf32>
    %299 = arith.addf %285, %298 : vector<32x32xf32>
    %c0_87 = arith.constant 0 : index
    %c10_88 = arith.constant 10 : index
    %c0_89 = arith.constant 0 : index
    %c0_90 = arith.constant 0 : index
    %300 = vector.load %arg0[%c0_87, %c10_88, %c0_89, %c0_90] : memref<1x12x33x33xf32, #tpu.memory_space<vmem>>, vector<1x1x32x32xf32>
    %301 = vector.shape_cast %300 : vector<1x1x32x32xf32> to vector<32x32xf32>
    %c21 = arith.constant 21 : index
    %302 = memref.load %arg1[%c21] : memref<81xf32, #tpu.memory_space<smem>>
    %303 = vector.broadcast %302 : f32 to vector<32x32xf32>
    %304 = arith.mulf %303, %301 : vector<32x32xf32>
    %305 = arith.addf %291, %304 : vector<32x32xf32>
    %c48 = arith.constant 48 : index
    %306 = memref.load %arg1[%c48] : memref<81xf32, #tpu.memory_space<smem>>
    %307 = vector.broadcast %306 : f32 to vector<32x32xf32>
    %308 = arith.mulf %307, %301 : vector<32x32xf32>
    %309 = arith.addf %295, %308 : vector<32x32xf32>
    %c75 = arith.constant 75 : index
    %310 = memref.load %arg1[%c75] : memref<81xf32, #tpu.memory_space<smem>>
    %311 = vector.broadcast %310 : f32 to vector<32x32xf32>
    %312 = arith.mulf %311, %301 : vector<32x32xf32>
    %313 = arith.addf %299, %312 : vector<32x32xf32>
    %c0_91 = arith.constant 0 : index
    %c11_92 = arith.constant 11 : index
    %c0_93 = arith.constant 0 : index
    %c0_94 = arith.constant 0 : index
    %314 = vector.load %arg0[%c0_91, %c11_92, %c0_93, %c0_94] : memref<1x12x33x33xf32, #tpu.memory_space<vmem>>, vector<1x1x32x32xf32>
    %315 = vector.shape_cast %314 : vector<1x1x32x32xf32> to vector<32x32xf32>
    %c22 = arith.constant 22 : index
    %316 = memref.load %arg1[%c22] : memref<81xf32, #tpu.memory_space<smem>>
    %317 = vector.broadcast %316 : f32 to vector<32x32xf32>
    %318 = arith.mulf %317, %315 : vector<32x32xf32>
    %319 = arith.addf %305, %318 : vector<32x32xf32>
    %c49 = arith.constant 49 : index
    %320 = memref.load %arg1[%c49] : memref<81xf32, #tpu.memory_space<smem>>
    %321 = vector.broadcast %320 : f32 to vector<32x32xf32>
    %322 = arith.mulf %321, %315 : vector<32x32xf32>
    %323 = arith.addf %309, %322 : vector<32x32xf32>
    %c76 = arith.constant 76 : index
    %324 = memref.load %arg1[%c76] : memref<81xf32, #tpu.memory_space<smem>>
    %325 = vector.broadcast %324 : f32 to vector<32x32xf32>
    %326 = arith.mulf %325, %315 : vector<32x32xf32>
    %327 = arith.addf %313, %326 : vector<32x32xf32>
    %c0_95 = arith.constant 0 : index
    %c10_96 = arith.constant 10 : index
    %c0_97 = arith.constant 0 : index
    %c1_98 = arith.constant 1 : index
    %328 = vector.load %arg0[%c0_95, %c10_96, %c0_97, %c1_98] : memref<1x12x33x33xf32, #tpu.memory_space<vmem>>, vector<1x1x32x32xf32>
    %329 = vector.shape_cast %328 : vector<1x1x32x32xf32> to vector<32x32xf32>
    %c23 = arith.constant 23 : index
    %330 = memref.load %arg1[%c23] : memref<81xf32, #tpu.memory_space<smem>>
    %331 = vector.broadcast %330 : f32 to vector<32x32xf32>
    %332 = arith.mulf %331, %329 : vector<32x32xf32>
    %333 = arith.addf %319, %332 : vector<32x32xf32>
    %c50 = arith.constant 50 : index
    %334 = memref.load %arg1[%c50] : memref<81xf32, #tpu.memory_space<smem>>
    %335 = vector.broadcast %334 : f32 to vector<32x32xf32>
    %336 = arith.mulf %335, %329 : vector<32x32xf32>
    %337 = arith.addf %323, %336 : vector<32x32xf32>
    %c77 = arith.constant 77 : index
    %338 = memref.load %arg1[%c77] : memref<81xf32, #tpu.memory_space<smem>>
    %339 = vector.broadcast %338 : f32 to vector<32x32xf32>
    %340 = arith.mulf %339, %329 : vector<32x32xf32>
    %341 = arith.addf %327, %340 : vector<32x32xf32>
    %c0_99 = arith.constant 0 : index
    %c8_100 = arith.constant 8 : index
    %c1_101 = arith.constant 1 : index
    %c0_102 = arith.constant 0 : index
    %342 = vector.load %arg0[%c0_99, %c8_100, %c1_101, %c0_102] : memref<1x12x33x33xf32, #tpu.memory_space<vmem>>, vector<1x1x32x32xf32>
    %343 = vector.shape_cast %342 : vector<1x1x32x32xf32> to vector<32x32xf32>
    %c24 = arith.constant 24 : index
    %344 = memref.load %arg1[%c24] : memref<81xf32, #tpu.memory_space<smem>>
    %345 = vector.broadcast %344 : f32 to vector<32x32xf32>
    %346 = arith.mulf %345, %343 : vector<32x32xf32>
    %347 = arith.addf %333, %346 : vector<32x32xf32>
    %c51 = arith.constant 51 : index
    %348 = memref.load %arg1[%c51] : memref<81xf32, #tpu.memory_space<smem>>
    %349 = vector.broadcast %348 : f32 to vector<32x32xf32>
    %350 = arith.mulf %349, %343 : vector<32x32xf32>
    %351 = arith.addf %337, %350 : vector<32x32xf32>
    %c78 = arith.constant 78 : index
    %352 = memref.load %arg1[%c78] : memref<81xf32, #tpu.memory_space<smem>>
    %353 = vector.broadcast %352 : f32 to vector<32x32xf32>
    %354 = arith.mulf %353, %343 : vector<32x32xf32>
    %355 = arith.addf %341, %354 : vector<32x32xf32>
    %c0_103 = arith.constant 0 : index
    %c9_104 = arith.constant 9 : index
    %c1_105 = arith.constant 1 : index
    %c0_106 = arith.constant 0 : index
    %356 = vector.load %arg0[%c0_103, %c9_104, %c1_105, %c0_106] : memref<1x12x33x33xf32, #tpu.memory_space<vmem>>, vector<1x1x32x32xf32>
    %357 = vector.shape_cast %356 : vector<1x1x32x32xf32> to vector<32x32xf32>
    %c25 = arith.constant 25 : index
    %358 = memref.load %arg1[%c25] : memref<81xf32, #tpu.memory_space<smem>>
    %359 = vector.broadcast %358 : f32 to vector<32x32xf32>
    %360 = arith.mulf %359, %357 : vector<32x32xf32>
    %361 = arith.addf %347, %360 : vector<32x32xf32>
    %c52 = arith.constant 52 : index
    %362 = memref.load %arg1[%c52] : memref<81xf32, #tpu.memory_space<smem>>
    %363 = vector.broadcast %362 : f32 to vector<32x32xf32>
    %364 = arith.mulf %363, %357 : vector<32x32xf32>
    %365 = arith.addf %351, %364 : vector<32x32xf32>
    %c79 = arith.constant 79 : index
    %366 = memref.load %arg1[%c79] : memref<81xf32, #tpu.memory_space<smem>>
    %367 = vector.broadcast %366 : f32 to vector<32x32xf32>
    %368 = arith.mulf %367, %357 : vector<32x32xf32>
    %369 = arith.addf %355, %368 : vector<32x32xf32>
    %c0_107 = arith.constant 0 : index
    %c8_108 = arith.constant 8 : index
    %c1_109 = arith.constant 1 : index
    %c1_110 = arith.constant 1 : index
    %370 = vector.load %arg0[%c0_107, %c8_108, %c1_109, %c1_110] : memref<1x12x33x33xf32, #tpu.memory_space<vmem>>, vector<1x1x32x32xf32>
    %371 = vector.shape_cast %370 : vector<1x1x32x32xf32> to vector<32x32xf32>
    %c26 = arith.constant 26 : index
    %372 = memref.load %arg1[%c26] : memref<81xf32, #tpu.memory_space<smem>>
    %373 = vector.broadcast %372 : f32 to vector<32x32xf32>
    %374 = arith.mulf %373, %371 : vector<32x32xf32>
    %375 = arith.addf %361, %374 : vector<32x32xf32>
    %c53 = arith.constant 53 : index
    %376 = memref.load %arg1[%c53] : memref<81xf32, #tpu.memory_space<smem>>
    %377 = vector.broadcast %376 : f32 to vector<32x32xf32>
    %378 = arith.mulf %377, %371 : vector<32x32xf32>
    %379 = arith.addf %365, %378 : vector<32x32xf32>
    %c80 = arith.constant 80 : index
    %380 = memref.load %arg1[%c80] : memref<81xf32, #tpu.memory_space<smem>>
    %381 = vector.broadcast %380 : f32 to vector<32x32xf32>
    %382 = arith.mulf %381, %371 : vector<32x32xf32>
    %383 = arith.addf %369, %382 : vector<32x32xf32>
    %c0_111 = arith.constant 0 : index
    %c0_112 = arith.constant 0 : index
    %c0_113 = arith.constant 0 : index
    %c0_114 = arith.constant 0 : index
    %384 = vector.load %arg3[%c0_111, %c0_112, %c0_113, %c0_114] : memref<1x3x32x32xf32, #tpu.memory_space<vmem>>, vector<1x1x32x32xf32>
    %385 = vector.shape_cast %384 : vector<1x1x32x32xf32> to vector<32x32xf32>
    %386 = vector.shape_cast %375 : vector<32x32xf32> to vector<1x1x32x32xf32>
    tpu.vector_store %arg3[%c0_111, %c0_112, %c0_113, %c0_114], %386 {strides = array<i32>} : memref<1x3x32x32xf32, #tpu.memory_space<vmem>>, vector<1x1x32x32xf32>,
    %c0_115 = arith.constant 0 : index
    %c1_116 = arith.constant 1 : index
    %c0_117 = arith.constant 0 : index
    %c0_118 = arith.constant 0 : index
    %387 = vector.load %arg3[%c0_115, %c1_116, %c0_117, %c0_118] : memref<1x3x32x32xf32, #tpu.memory_space<vmem>>, vector<1x1x32x32xf32>
    %388 = vector.shape_cast %387 : vector<1x1x32x32xf32> to vector<32x32xf32>
    %389 = vector.shape_cast %379 : vector<32x32xf32> to vector<1x1x32x32xf32>
    tpu.vector_store %arg3[%c0_115, %c1_116, %c0_117, %c0_118], %389 {strides = array<i32>} : memref<1x3x32x32xf32, #tpu.memory_space<vmem>>, vector<1x1x32x32xf32>,
    %c0_119 = arith.constant 0 : index
    %c2_120 = arith.constant 2 : index
    %c0_121 = arith.constant 0 : index
    %c0_122 = arith.constant 0 : index
    %390 = vector.load %arg3[%c0_119, %c2_120, %c0_121, %c0_122] : memref<1x3x32x32xf32, #tpu.memory_space<vmem>>, vector<1x1x32x32xf32>
    %391 = vector.shape_cast %390 : vector<1x1x32x32xf32> to vector<32x32xf32>
    %392 = vector.shape_cast %383 : vector<32x32xf32> to vector<1x1x32x32xf32>
    tpu.vector_store %arg3[%c0_119, %c2_120, %c0_121, %c0_122], %392 {strides = array<i32>} : memref<1x3x32x32xf32, #tpu.memory_space<vmem>>, vector<1x1x32x32xf32>,
    return
  }
}

</mosaic_0001>

<bundles_post_ra>
// kernel: conv2d_pallas.1
= control target key start
LH: loop header
LB: loop body
LE: loop exit
PB: predicated region body
PF: predicated region fallthrough
CT: control target
= control target key end

     0   :  { %8 = vsyncpa [#allocation4], 0  ;;  %s3123_s0 = inlined_call_operand.vmem [shape: f32[1,12,33,33], index: 0, kind: input, shape index: {}]   ;;  %s3124_s1 = inlined_call_operand.vmem [shape: f32[81], index: 1, kind: input, shape index: {}]   ;;  %s3125_s2 = inlined_call_operand.vmem [shape: f32[3], index: 2, kind: input, shape index: {}]   ;;  %s3126_s3 = inlined_call_operand.hbm [shape: f32[1,3,32,32], index: 3, kind: output, shape index: {}]  }
   0x1   :  { %9 = vsyncpa [#allocation6], 0 }
   0x2   :  { %10 = vsyncpa [#allocation3], 0  ;;  %s19_s14 = sshll.u32 %s3124_s1, 4  ;;  %s29_s17 = sshll.u32 %s3125_s2, 4  ;;  %s20_s14 = int_to_ptr.vmem [resolvable:$true] %s19_s14  ;;  %s30_s17 = int_to_ptr.vmem [resolvable:$true] %s29_s17 }
   0x3   :  { %s1564_s18 = scalar_lea.vmem %s20_s14, 16  ;;  %p1569_p1 = scmp.lt.s32.totalorder %s20_s14, %s20_s14 }
   0x4   :  { %p1565_p0 = scmp.ne.s32.totalorder %s20_s14, %s1564_s18  ;;  %p1570_p2 = scmp.lt.s32.totalorder %s1564_s18, %s1564_s18 }
   0x6   :  { %p1571_p3 = por %p1570_p2, %p1569_p1 }
   0x8   :  { %p1572_p4 = pnand %p1571_p3, %p1565_p0 }
   0xa   :  { %1575 = shalt.err (!%p1572_p4)
}
   0xb   :  { %s1616_s19 = smov [#allocation2]   ;;  %s1576_s20 = scalar_lea.vmem %s30_s17, 16 }
   0xc   :  { %22 = dma.vmem_to_smem %s20_s14, 16, %s1616_s19, [#allocation4]  }
   0xd   :  { %p1577_p5 = scmp.ne.s32.totalorder %s30_s17, %s1576_s20  ;;  %p1581_p6 = scmp.lt.s32.totalorder %s30_s17, %s30_s17 }
   0xe   :  { %p1582_p7 = scmp.lt.s32.totalorder %s1576_s20, %s1576_s20 }
  0x10   :  { %p1583_p8 = por %p1582_p7, %p1581_p6 }
  0x12   :  { %p1584_p9 = pnand %p1583_p8, %p1577_p5 }
  0x14   :  { %1587 = shalt.err (!%p1584_p9)
}
  0x15   :  { %s1617_s1 = smov [#allocation5]  }
  0x16   :  { %32 = dma.vmem_to_smem %s30_s17, 16, %s1617_s1, [#allocation6]  }
  0x17   :  { %1610 = dma.done.wait [#allocation4], 16  }
  0x18   :  { %1611 = vsyncadd [#allocation4], 4294967280 }
  0x19   :  { %1612 = dma.done.wait [#allocation6], 16  }
  0x1a   :  { %1613 = vsyncadd [#allocation6], 4294967280 }
  0x1b   :  { %39 = sfence }
  0x1c   :  { %s1415_s2 = sld [smem:[#allocation2 + $0x2]]  ;;  %s1416_s21 = sld [smem:[#allocation2 + $0x1d]]  ;;  %v1651_v0 = vld [vmem:[%s3123_s0 + $0x10] sm:$0xff]  ;;  %v1656_v1 = vld [vmem:[%s3123_s0] sm:$0xff]  ;;  %v1661_v3 = vld [vmem:[%s3123_s0 + $0x18] sm:$0xff]  ;;  %vm1371_vm0 = vcmask 261120  }
  0x1d   :  { %v1666_v4 = vld [vmem:[%s3123_s0 + $0x8] sm:$0xff]  ;;  %s1618_s30 = smov 127   ;;  %s1417_s4 = sld [smem:[#allocation2 + $0x38]]  ;;  %v1693_v19 = vld [vmem:[%s3123_s0 + $0x58] sm:$0xff]  ;;  %v1698_v21 = vld [vmem:[%s3123_s0 + $0x50] sm:$0xff] }
  0x1e   :  { %s1432_s5 = sld [smem:[#allocation2 + $0x5]]  ;;  %s1433_s10 = sld [smem:[#allocation2 + $0x20]]  ;;  %v1707_v24 = vld [vmem:[%s3123_s0 + $0x68] sm:$0xff]  ;;  %v1712_v25 = vld [vmem:[%s3123_s0 + $0x60] sm:$0xff]  ;;  %v1756_v44 = vld [vmem:[%s3123_s0 + $0x11] sm:$0xff] }
  0x1f   :  { %s1434_s15 = sld [smem:[#allocation2 + $0x3b]]  ;;  %s1445_s16 = sld [smem:[#allocation2 + $0x8]]  ;;  %v1737_v38 = vld [vmem:[%s3123_s0 + $0x9] sm:$0xff]  ;;  %v1742_v40 = vld [vmem:[%s3123_s0 + $0x1] sm:$0xff]  ;;  %v1751_v43 = vld [vmem:[%s3123_s0 + $0x19] sm:$0xff] }
  0x20   :  { %s1446_s1 = sld [smem:[#allocation2 + $0x23]]  ;;  %s1447_s24 = sld [smem:[#allocation2 + $0x3e]]  ;;  %v1781_v57 = vld [vmem:[%s3123_s0 + $0xa8] sm:$0xff]  ;;  %v1786_v59 = vld [vmem:[%s3123_s0 + $0xa0] sm:$0xff]  ;;  %v1795_v62 = vld [vmem:[%s3123_s0 + $0xb8] sm:$0xff] }
  0x21   :  { %s1462_s25 = sld [smem:[#allocation2 + $0xb]]  ;;  %v1800_v63 = vld [vmem:[%s3123_s0 + $0xb0] sm:$0xff]  ;;  %s1464_s9 = sld [smem:[#allocation2 + $0x41]] }
  0x22   :  { %v116_v2 = vstv %s1415_s2  ;;  %v142_v9 = vstv %s1416_s21  ;;  %s1412_s2 = sld [smem:[#allocation2 + $0x1]]  ;;  %s1422_s21 = sld [smem:[#allocation2 + $0x3]] }
  0x23   :  { %v119_v5 = vmul.f32 %v116_v2, %v1651_v0  ;;  %v117_v6 = vmul.f32 %v116_v2, %v1656_v1  ;;  %v120_v7 = vmul.f32 %v116_v2, %v1661_v3  ;;  %v118_v8 = vmul.f32 %v116_v2, %v1666_v4  ;;  %s40_s22 = sld [smem:[#allocation5]]  ;;  %s1847_s23 = sld [smem:[#allocation2 + $0x1b]] }
  0x24   :  { %v144_v10 = vmul.f32 %v142_v9, %v1666_v4  ;;  %v143_v11 = vmul.f32 %v142_v9, %v1656_v1  ;;  %v146_v12 = vmul.f32 %v142_v9, %v1661_v3  ;;  %v145_v13 = vmul.f32 %v142_v9, %v1651_v0  ;;  %s1862_s27 = sld [smem:[#allocation2 + $0x1c]]  ;;  %s1864_s28 = sld [smem:[#allocation5 + $0x1]] }
  0x25   :  { %129 = vrot.lane.b32.xlu1 %v119_v5, %s1618_s30  ;;  %125 = vrot.lane.b32.xlu0 %v117_v6, %s1618_s30  ;;  %v168_v14 = vstv %s1417_s4  ;;  %v264_v20 = vstv %s1432_s5  ;;  %s1463_s4 = sld [smem:[#allocation2 + $0x26]]  ;;  %s1929_s17 = sld [smem:[#allocation2 + $0x2c]] }
  0x26   :  { %v170_v15 = vmul.f32 %v168_v14, %v1666_v4  ;;  %v169_v16 = vmul.f32 %v168_v14, %v1656_v1  ;;  %v172_v17 = vmul.f32 %v168_v14, %v1661_v3  ;;  %v171_v18 = vmul.f32 %v168_v14, %v1651_v0  ;;  %s1876_s5 = sld [smem:[#allocation2 + $0x1e]]  ;;  %s2068_s11 = sld [smem:[#allocation2 + $0x2f]] }
  0x27   :  { %v266_v22 = vmul.f32 %v1693_v19, %v264_v20  ;;  %v265_v23 = vmul.f32 %v1698_v21, %v264_v20  ;;  %v268_v26 = vmul.f32 %v1707_v24, %v264_v20  ;;  %v267_v27 = vmul.f32 %v1712_v25, %v264_v20  ;;  %s2070_s12 = sld [smem:[#allocation2 + $0x3a]]  ;;  %s2096_s19 = sld [smem:[#allocation2 + $0x3c]] }
  0x28   :  { %v290_v28 = vstv %s1433_s10  ;;  %v316_v33 = vstv %s1434_s15  ;;  %v410_v39 = vstv %s1445_s16  ;;  %v436_v47 = vstv %s1446_s1  ;;  %s1479_s10 = sld [smem:[#allocation2 + $0xe]]  ;;  %s1480_s15 = sld [smem:[#allocation2 + $0x29]] }
  0x29   :  { %131 = vrot.lane.b32.xlu1 %v120_v7, %s1618_s30  ;;  %127 = vrot.lane.b32.xlu0 %v118_v8, %s1618_s30  ;;  %v292_v29 = vmul.f32 %v1693_v19, %v290_v28  ;;  %v291_v30 = vmul.f32 %v1698_v21, %v290_v28  ;;  %v294_v31 = vmul.f32 %v1707_v24, %v290_v28  ;;  %v462_v52 = vstv %s1447_s24  ;;  %s50_s16 = sld [smem:[#allocation2]]  ;;  %s1481_s1 = sld [smem:[#allocation2 + $0x44]] }
  0x2a   :  { %v293_v32 = vmul.f32 %v1712_v25, %v290_v28  ;;  %v318_v34 = vmul.f32 %v1693_v19, %v316_v33  ;;  %v317_v35 = vmul.f32 %v1698_v21, %v316_v33  ;;  %v320_v36 = vmul.f32 %v1707_v24, %v316_v33  ;;  %s1853_s24 = sld [smem:[#allocation2 + $0x11]]  ;;  %s2120_s20 = sld [smem:[#allocation2 + $0x4a]] }
  0x2b   :  { %v319_v37 = vmul.f32 %v1712_v25, %v316_v33  ;;  %v412_v41 = vmul.f32 %v410_v39, %v1737_v38  ;;  %v411_v42 = vmul.f32 %v410_v39, %v1742_v40  ;;  %v414_v45 = vmul.f32 %v410_v39, %v1751_v43  ;;  %s2219_s8 = sld [smem:[#allocation2 + $0x32]]  ;;  %s2431_s14 = sld [smem:[#allocation2 + $0xd]] }
  0x2c   :  { %v413_v46 = vmul.f32 %v410_v39, %v1756_v44  ;;  %v438_v48 = vmul.f32 %v436_v47, %v1737_v38  ;;  %v437_v49 = vmul.f32 %v436_v47, %v1742_v40  ;;  %v440_v50 = vmul.f32 %v436_v47, %v1751_v43  ;;  %s2273_s18 = sld [smem:[#allocation2 + $0xa]]  ;;  %s1493_s6 = sld [smem:[#allocation2 + $0x10]] }
  0x2d   :  { %153 = vrot.lane.b32.xlu1 %v144_v10, %s1618_s30  ;;  %151 = vrot.lane.b32.xlu0 %v143_v11, %s1618_s30  ;;  %v439_v51 = vmul.f32 %v436_v47, %v1756_v44  ;;  %v464_v53 = vmul.f32 %v462_v52, %v1737_v38  ;;  %v463_v54 = vmul.f32 %v462_v52, %v1742_v40  ;;  %v558_v58 = vstv %s1462_s25  ;;  %s2009_s25 = sld [smem:[#allocation2 + $0x1f]]  ;;  %s2410_s13 = sld [smem:[#allocation2 + $0x42]] }
  0x2e   :  { %v466_v55 = vmul.f32 %v462_v52, %v1751_v43  ;;  %v465_v56 = vmul.f32 %v462_v52, %v1756_v44  ;;  %v560_v60 = vmul.f32 %v1781_v57, %v558_v58  ;;  %v559_v61 = vmul.f32 %v1786_v59, %v558_v58  ;;  %s1487_s7 = sld [smem:[#allocation2 + $0x2a]]  ;;  %s2917_s26 = sld [smem:[#allocation2 + $0x33]] }
  0x2f   :  { %v562_v2 = vmul.f32 %v1795_v62, %v558_v58  ;;  %v561_v5 = vmul.f32 %v1800_v63, %v558_v58  ;;  %v584_v6 = vstv %s1463_s4  ;;  %v610_v11 = vstv %s1464_s9  ;;  %v1891_v58 = vld [vmem:[%s3123_s0 + $0x30] sm:$0xff]  ;;  %s2035_s4 = sld [smem:[#allocation2 + $0x21]]  ;;  %s2221_s9 = sld [smem:[#allocation2 + $0x3d]] }
  0x30   :  { %v586_v7 = vmul.f32 %v1781_v57, %v584_v6  ;;  %v585_v8 = vmul.f32 %v1786_v59, %v584_v6  ;;  %v588_v9 = vmul.f32 %v1795_v62, %v584_v6  ;;  %v587_v10 = vmul.f32 %v1800_v63, %v584_v6 }
  0x31   :  { %157 = vrot.lane.b32.xlu1 %v146_v12, %s1618_s30  ;;  %155 = vrot.lane.b32.xlu0 %v145_v13, %s1618_s30  ;;  %v612_v12 = vmul.f32 %v1781_v57, %v610_v11  ;;  %v611_v13 = vmul.f32 %v1786_v59, %v610_v11  ;;  %v614_v14 = vmul.f32 %v1795_v62, %v610_v11  ;;  %v758_v33 = vstv %s1481_s1  ;;  %s2122_s1 = sld [smem:[#allocation2 + $0x7]] }
  0x32   :  { %v41_v39 = vstv %s40_s22  ;;  %s1982_s22 = sld [smem:[#allocation2 + $0x4]] }
  0x35   :  { %179 = vrot.lane.b32.xlu1 %v170_v15, %s1618_s30  ;;  %177 = vrot.lane.b32.xlu0 %v169_v16, %s1618_s30  ;;  %v613_v15 = vmul.f32 %v1800_v63, %v610_v11  ;;  %v1825_v16 = vld [vmem:[%s3123_s0 + $0xf8] sm:$0xff]  ;;  %v1913_v11 = vld [vmem:[%s3123_s0 + $0xa1] sm:$0xff] }
  0x36   :  { %v760_v47 = vmul.f32 %v1825_v16, %v758_v33 }
  0x39   :  { %183 = vrot.lane.b32.xlu1 %v172_v17, %s1618_s30  ;;  %181 = vrot.lane.b32.xlu0 %v171_v18, %s1618_s30  ;;  %v706_v17 = vstv %s1479_s10  ;;  %v1830_v18 = vld [vmem:[%s3123_s0 + $0xf0] sm:$0xff]  ;;  %s1894_s10 = sld [smem:[#allocation2 + $0x36]] }
  0x3a   :  { %v708_v20 = vmul.f32 %v1825_v16, %v706_v17 }
  0x3d   :  { %275 = vrot.lane.b32.xlu1 %v266_v22, %s1618_s30  ;;  %273 = vrot.lane.b32.xlu0 %v265_v23, %s1618_s30  ;;  %v707_v22 = vmul.f32 %v1830_v18, %v706_v17  ;;  %v1839_v23 = vld [vmem:[%s3123_s0 + $0x108] sm:$0xff] }
  0x41   :  { %279 = vrot.lane.b32.xlu1 %v268_v26, %s1618_s30  ;;  %277 = vrot.lane.b32.xlu0 %v267_v27, %s1618_s30  ;;  %v1467_v26 = vld [vmem:[%s3123_s0 + $0x100] sm:$0xff]  ;;  %v710_v27 = vmul.f32 %v1839_v23, %v706_v17 }
  0x42   :  { %v709_v28 = vmul.f32 %v1467_v26, %v706_v17 }
  0x45   :  { %301 = vrot.lane.b32.xlu1 %v292_v29, %s1618_s30  ;;  %299 = vrot.lane.b32.xlu0 %v291_v30, %s1618_s30  ;;  %v732_v29 = vstv %s1480_s15  ;;  %v51_v30 = vstv %s50_s16  ;;  %s1918_s15 = sld [smem:[#allocation2 + $0x37]]  ;;  %s1922_s16 = sld [smem:[#allocation5 + $0x2]] }
  0x49   :  { %305 = vrot.lane.b32.xlu1 %v294_v31, %s1618_s30  ;;  %303 = vrot.lane.b32.xlu0 %v293_v32, %s1618_s30  ;;  %v734_v31 = vmul.f32 %v1825_v16, %v732_v29  ;;  %v733_v32 = vmul.f32 %v1830_v18, %v732_v29 }
  0x4d   :  { %327 = vrot.lane.b32.xlu1 %v318_v34, %s1618_s30  ;;  %325 = vrot.lane.b32.xlu0 %v317_v35, %s1618_s30  ;;  %v54_v34 = vmul.f32 %v51_v30, %v1651_v0  ;;  %v1859_v35 = vld [vmem:[%s3123_s0 + $0x38] sm:$0xff] }
  0x4f   :  { %v58_v52 = vadd.f32 %v54_v34, %v41_v39 }
  0x51   :  { %331 = vrot.lane.b32.xlu1 %v320_v36, %s1618_s30  ;;  %329 = vrot.lane.b32.xlu0 %v319_v37, %s1618_s30  ;;  %v86_v36 = vstv %s1412_s2  ;;  %v199_v37 = vstv %s1422_s21  ;;  %s1959_s2 = sld [smem:[#allocation2 + $0x39]]  ;;  %s1977_s21 = sld [smem:[#allocation2 + $0x47]] }
  0x55   :  { %421 = vrot.lane.b32.xlu1 %v412_v41, %s1618_s30  ;;  %419 = vrot.lane.b32.xlu0 %v411_v42, %s1618_s30  ;;  %v52_v41 = vmul.f32 %v51_v30, %v1656_v1  ;;  %v736_v42 = vmul.f32 %v1839_v23, %v732_v29 }
  0x59   :  { %425 = vrot.lane.b32.xlu1 %v414_v45, %s1618_s30  ;;  %423 = vrot.lane.b32.xlu0 %v413_v46, %s1618_s30  ;;  %v735_v45 = vmul.f32 %v1467_v26, %v732_v29  ;;  %v1872_v46 = vld [vmem:[%s3123_s0 + $0x28] sm:$0xff] }
  0x5d   :  { %447 = vrot.lane.b32.xlu1 %v438_v48, %s1618_s30  ;;  %445 = vrot.lane.b32.xlu0 %v437_v49, %s1618_s30  ;;  %v55_v48 = vmul.f32 %v51_v30, %v1661_v3  ;;  %v759_v49 = vmul.f32 %v1830_v18, %v758_v33 }
  0x61   :  { %451 = vrot.lane.b32.xlu1 %v440_v50, %s1618_s30  ;;  %449 = vrot.lane.b32.xlu0 %v439_v51, %s1618_s30  ;;  %v89_v50 = vmul.f32 %v1859_v35, %v86_v36  ;;  %v202_v51 = vmul.f32 %v1712_v25, %v199_v37 }
  0x65   :  { %473 = vrot.lane.b32.xlu1 %v464_v53, %s1618_s30  ;;  %471 = vrot.lane.b32.xlu0 %v463_v54, %s1618_s30  ;;  %v1884_v53 = vld [vmem:[%s3123_s0 + $0x40] sm:$0xff]  ;;  %v87_v54 = vmul.f32 %v1872_v46, %v86_v36 }
  0x66   :  { %v90_v6 = vmul.f32 %v1884_v53, %v86_v36 }
  0x69   :  { %477 = vrot.lane.b32.xlu1 %v466_v55, %s1618_s30  ;;  %475 = vrot.lane.b32.xlu0 %v465_v56, %s1618_s30  ;;  %v56_v55 = vadd.f32 %v52_v41, %v41_v39  ;;  %v53_v56 = vmul.f32 %v51_v30, %v1666_v4 }
  0x6b   :  { %v91_v17 = vadd.f32 %v87_v54, %v56_v55 }
  0x6d   :  { %569 = vrot.lane.b32.xlu1 %v560_v60, %s1618_s30  ;;  %567 = vrot.lane.b32.xlu0 %v559_v61, %s1618_s30  ;;  %v61_v60 = vstv %s1847_s23  ;;  %v200_v61 = vmul.f32 %v1698_v21, %v199_v37  ;;  %s1985_s23 = sld [smem:[#allocation2 + $0x6]] }
  0x71   :  { %573 = vrot.lane.b32.xlu1 %v562_v2, %s1618_s30  ;;  %571 = vrot.lane.b32.xlu0 %v561_v5, %s1618_s30  ;;  %v762_v2 = vmul.f32 %v1839_v23, %v758_v33  ;;  %v761_v5 = vmul.f32 %v1467_v26, %v758_v33  ;;  %v43_v26 = vstv %s1864_s28  ;;  %v64_v33 = vmul.f32 %v61_v60, %v1651_v0 }
  0x75   :  { %595 = vrot.lane.b32.xlu1 %v586_v7, %s1618_s30  ;;  %593 = vrot.lane.b32.xlu0 %v585_v8, %s1618_s30  ;;  %v1902_v7 = vmul.f32 %v1707_v24, %v199_v37  ;;  %v59_v8 = vadd.f32 %v55_v48, %v41_v39 }
  0x77   :  { %v94_v30 = vadd.f32 %v90_v6, %v59_v8  ;;  %v68_v6 = vadd.f32 %v64_v33, %v43_v26 }
  0x79   :  { %599 = vrot.lane.b32.xlu1 %v588_v9, %s1618_s30  ;;  %597 = vrot.lane.b32.xlu0 %v587_v10, %s1618_s30  ;;  %v1907_v9 = vld [vmem:[%s3123_s0 + $0xa9] sm:$0xff]  ;;  %v852_v10 = vstv %s1853_s24  ;;  %s2007_s24 = sld [smem:[#allocation2 + $0x14]] }
  0x7a   :  { %v853_v29 = vmul.f32 %v1913_v11, %v852_v10 }
  0x7d   :  { %621 = vrot.lane.b32.xlu1 %v612_v12, %s1618_s30  ;;  %619 = vrot.lane.b32.xlu0 %v611_v13, %s1618_s30  ;;  %v93_v12 = vadd.f32 %v89_v50, %v58_v52  ;;  %v88_v13 = vmul.f32 %v1891_v58, %v86_v36 }
  0x81   :  { %625 = vrot.lane.b32.xlu1 %v614_v14, %s1618_s30  ;;  %623 = vrot.lane.b32.xlu0 %v613_v15, %s1618_s30  ;;  %v63_v14 = vmul.f32 %v61_v60, %v1666_v4  ;;  %v62_v15 = vmul.f32 %v61_v60, %v1656_v1 }
  0x83   :  { %v67_v41 = vadd.f32 %v63_v14, %v43_v26 }
  0x85   :  { %717 = vrot.lane.b32.xlu1 %v708_v20, %s1618_s30  ;;  %715 = vrot.lane.b32.xlu0 %v707_v22, %s1618_s30  ;;  %v57_v20 = vadd.f32 %v53_v56, %v41_v39  ;;  %v96_v22 = vstv %s1862_s27  ;;  %s2181_s27 = sld [smem:[#allocation2 + $0x24]] }
  0x86   :  { %v98_v39 = vmul.f32 %v1891_v58, %v96_v22  ;;  %v100_v52 = vmul.f32 %v1884_v53, %v96_v22  ;;  %v99_v54 = vmul.f32 %v1859_v35, %v96_v22 }
  0x87   :  { %v92_v48 = vadd.f32 %v88_v13, %v57_v20  ;;  %v106_v13 = vstv %s1918_s15  ;;  %v45_v20 = vstv %s1922_s16  ;;  %s2438_s15 = sld [smem:[#allocation2 + $0x50]]  ;;  %s2593_s16 = sld [smem:[#allocation2 + $0x13]] }
  0x89   :  { %721 = vrot.lane.b32.xlu1 %v710_v27, %s1618_s30  ;;  %719 = vrot.lane.b32.xlu0 %v709_v28, %s1618_s30  ;;  %v201_v27 = vmul.f32 %v1693_v19, %v199_v37  ;;  %v854_v28 = vmul.f32 %v1907_v9, %v852_v10  ;;  %v97_v37 = vmul.f32 %v1872_v46, %v96_v22 }
  0x8d   :  { %743 = vrot.lane.b32.xlu1 %v734_v31, %s1618_s30  ;;  %741 = vrot.lane.b32.xlu0 %v733_v32, %s1618_s30  ;;  %v1932_v31 = vstv %s1876_s5  ;;  %v65_v32 = vmul.f32 %v61_v60, %v1661_v3  ;;  %v1952_v60 = vld [vmem:[%s3123_s0 + $0xb9] sm:$0xff]  ;;  %s2374_s5 = sld [smem:[#allocation2 + $0x40]] }
  0x8e   :  { %v211_v50 = vmul.f32 %v1693_v19, %v1932_v31 }
  0x91   :  { %747 = vrot.lane.b32.xlu1 %v736_v42, %s1618_s30  ;;  %745 = vrot.lane.b32.xlu0 %v735_v45, %s1618_s30  ;;  %v66_v42 = vadd.f32 %v62_v15, %v43_v26 }
  0x95   :  { %769 = vrot.lane.b32.xlu1 %v760_v47, %s1618_s30  ;;  %767 = vrot.lane.b32.xlu0 %v759_v49, %s1618_s30  ;;  %v71_v49 = vstv %s1894_s10  ;;  %s2579_s10 = sld [smem:[#allocation2 + $0x46]] }
  0x96   :  { %v73_v14 = vmul.f32 %v71_v49, %v1666_v4  ;;  %v72_v22 = vmul.f32 %v71_v49, %v1656_v1 }
  0x97   :  { %v130_v34 = vpop.permute.xlu1 %129  ;;  %v126_v36 = vpop.permute.xlu0 %125 }
  0x98   :  { %v139_v45 = vadd.f32 %v130_v34, %v93_v12  ;;  %v137_v47 = vadd.f32 %v126_v36, %v91_v17  ;;  %v102_v12 = vadd.f32 %v98_v39, %v67_v41  ;;  %v878_v34 = vstv %s1929_s17  ;;  %s2271_s17 = sld [smem:[#allocation2 + $0x4d]] }
  0x99   :  { %773 = vrot.lane.b32.xlu1 %v762_v2, %s1618_s30  ;;  %771 = vrot.lane.b32.xlu0 %v761_v5, %s1618_s30  ;;  %v1957_v2 = vld [vmem:[%s3123_s0 + $0xb1] sm:$0xff]  ;;  %v69_v5 = vadd.f32 %v65_v32, %v43_v26  ;;  %v210_v26 = vmul.f32 %v1698_v21, %v1932_v31  ;;  %v856_v32 = vmul.f32 %v1952_v60, %v852_v10 }
  0x9a   :  { %v1945_v55 = vadd.f32 %v202_v51, %v139_v45  ;;  %v1947_v56 = vadd.f32 %v200_v61, %v137_v47  ;;  %v101_v61 = vadd.f32 %v97_v37, %v66_v42  ;;  %v855_v33 = vmul.f32 %v1957_v2, %v852_v10 }
  0x9b   :  { %v132_v8 = vpop.permute.xlu1 %131  ;;  %v128_v51 = vpop.permute.xlu0 %127  ;;  %v103_v39 = vadd.f32 %v99_v54, %v68_v6  ;;  %v77_v41 = vadd.f32 %v73_v14, %v45_v20  ;;  %v107_v37 = vmul.f32 %v1872_v46, %v106_v13  ;;  %v75_v10 = vmul.f32 %v71_v49, %v1661_v3 }
  0x9c   :  { %v140_v15 = vadd.f32 %v132_v8, %v94_v30  ;;  %v138_v17 = vadd.f32 %v128_v51, %v92_v48  ;;  %v104_v30 = vadd.f32 %v100_v52, %v69_v5  ;;  %v74_v45 = vmul.f32 %v71_v49, %v1651_v0 }
  0x9d   :  { %863 = vrot.lane.b32.xlu1 %v854_v28, %s1618_s30  ;;  %861 = vrot.lane.b32.xlu0 %v853_v29, %s1618_s30  ;;  %v108_v29 = vmul.f32 %v1891_v58, %v106_v13  ;;  %v213_v58 = vmul.f32 %v1707_v24, %v1932_v31  ;;  %v880_v46 = vmul.f32 %v1907_v9, %v878_v34  ;;  %v219_v49 = vstv %s1959_s2  ;;  %s2134_s2 = sld [smem:[#allocation2 + $0x9]] }
  0x9e   :  { %v1973_v36 = vadd.f32 %v1902_v7, %v140_v15  ;;  %v1975_v4 = vadd.f32 %v201_v27, %v138_v17  ;;  %v76_v27 = vadd.f32 %v72_v22, %v45_v20  ;;  %v879_v3 = vmul.f32 %v1913_v11, %v878_v34 }
  0x9f   :  { %v154_v1 = vpop.permute.xlu1 %153  ;;  %v152_v28 = vpop.permute.xlu0 %151  ;;  %v212_v0 = vmul.f32 %v1712_v25, %v1932_v31  ;;  %v112_v5 = vadd.f32 %v108_v29, %v77_v41  ;;  %v110_v6 = vmul.f32 %v1884_v53, %v106_v13  ;;  %v79_v8 = vadd.f32 %v75_v10, %v45_v20 }
  0xa0   :  { %v164_v7 = vadd.f32 %v154_v1, %v102_v12  ;;  %v163_v42 = vadd.f32 %v152_v28, %v101_v61  ;;  %v109_v51 = vmul.f32 %v1859_v35, %v106_v13  ;;  %v111_v14 = vadd.f32 %v107_v37, %v76_v27  ;;  %v2046_v27 = vld [vmem:[%s3123_s0 + $0x90] sm:$0xff] }
  0xa1   :  { %867 = vrot.lane.b32.xlu1 %v856_v32, %s1618_s30  ;;  %865 = vrot.lane.b32.xlu0 %v855_v33, %s1618_s30  ;;  %v221_v31 = vmul.f32 %v1693_v19, %v219_v49  ;;  %v882_v15 = vmul.f32 %v1952_v60, %v878_v34  ;;  %v881_v17 = vmul.f32 %v1957_v2, %v878_v34  ;;  %v2021_v33 = vld [vmem:[%s3123_s0 + $0x80] sm:$0xff]  ;;  %v234_v34 = vstv %s1982_s22  ;;  %s2159_s22 = sld [smem:[#allocation2 + $0x22]] }
  0xa2   :  { %v1993_v47 = vadd.f32 %v211_v50, %v164_v7  ;;  %v1995_v48 = vadd.f32 %v210_v26, %v163_v42  ;;  %v78_v50 = vadd.f32 %v74_v45, %v45_v20  ;;  %v220_v13 = vmul.f32 %v1698_v21, %v219_v49 }
  0xa3   :  { %v158_v52 = vpop.permute.xlu1 %157  ;;  %v156_v54 = vpop.permute.xlu0 %155  ;;  %v904_v20 = vstv %s1977_s21  ;;  %v223_v19 = vmul.f32 %v1707_v24, %v219_v49  ;;  %v114_v32 = vadd.f32 %v110_v6, %v79_v8  ;;  %v346_v28 = vstv %s1985_s23  ;;  %s2157_s21 = sld [smem:[#allocation2 + $0x17]] }
  0xa4   :  { %v166_v12 = vadd.f32 %v158_v52, %v104_v30  ;;  %v165_v61 = vadd.f32 %v156_v54, %v103_v39  ;;  %v2027_v30 = vld [vmem:[%s3123_s0 + $0x78] sm:$0xff]  ;;  %v113_v21 = vadd.f32 %v109_v51, %v78_v50  ;;  %v222_v24 = vmul.f32 %v1712_v25, %v219_v49  ;;  %v2051_v25 = vld [vmem:[%s3123_s0 + $0x88] sm:$0xff] }
  0xa5   :  { %889 = vrot.lane.b32.xlu1 %v880_v46, %s1618_s30  ;;  %887 = vrot.lane.b32.xlu0 %v879_v3, %s1618_s30  ;;  %v906_v29 = vmul.f32 %v1907_v9, %v904_v20  ;;  %v905_v41 = vmul.f32 %v1913_v11, %v904_v20  ;;  %v236_v7 = vmul.f32 %v2021_v33, %v234_v34  ;;  %v2060_v52 = vld [vmem:[%s3123_s0 + $0x148] sm:$0xff]  ;;  %v1000_v6 = vstv %s2007_s24  ;;  %s2339_s24 = sld [smem:[#allocation2 + $0x27]] }
  0xa6   :  { %v2011_v35 = vadd.f32 %v213_v58, %v166_v12  ;;  %v2013_v53 = vadd.f32 %v212_v0, %v165_v61  ;;  %v235_v42 = vmul.f32 %v2027_v30, %v234_v34  ;;  %v348_v45 = vmul.f32 %v346_v28, %v1737_v38  ;;  %v2081_v61 = vld [vmem:[%s3123_s0 + $0x140] sm:$0xff] }
  0xa7   :  { %v180_v22 = vpop.permute.xlu1 %179  ;;  %v178_v26 = vpop.permute.xlu0 %177  ;;  %v347_v58 = vmul.f32 %v346_v28, %v1742_v40  ;;  %v908_v0 = vmul.f32 %v1952_v60, %v904_v20  ;;  %v907_v49 = vmul.f32 %v1957_v2, %v904_v20  ;;  %v238_v54 = vmul.f32 %v2046_v27, %v234_v34 }
  0xa8   :  { %v190_v39 = vadd.f32 %v180_v22, %v112_v5  ;;  %v189_v1 = vadd.f32 %v178_v26, %v111_v14  ;;  %v237_v5 = vmul.f32 %v2051_v25, %v234_v34  ;;  %v244_v8 = vstv %s2009_s25  ;;  %s2839_s25 = sld [smem:[#allocation2 + $0x19]] }
  0xa9   :  { %893 = vrot.lane.b32.xlu1 %v882_v15, %s1618_s30  ;;  %891 = vrot.lane.b32.xlu0 %v881_v17, %s1618_s30  ;;  %v240_v51 = vadd.f32 %v236_v7, %v1975_v4  ;;  %v239_v12 = vadd.f32 %v235_v42, %v1947_v56  ;;  %v1002_v20 = vmul.f32 %v2060_v52, %v1000_v6  ;;  %v2089_v56 = vld [vmem:[%s3123_s0 + $0x158] sm:$0xff]  ;;  %v2094_v4 = vld [vmem:[%s3123_s0 + $0x150] sm:$0xff] }
  0xaa   :  { %v2037_v37 = vadd.f32 %v221_v31, %v190_v39  ;;  %v2039_v10 = vadd.f32 %v220_v13, %v189_v1  ;;  %v350_v31 = vmul.f32 %v346_v28, %v1751_v43  ;;  %v349_v13 = vmul.f32 %v346_v28, %v1756_v44 }
  0xab   :  { %v184_v9 = vpop.permute.xlu1 %183  ;;  %v182_v11 = vpop.permute.xlu0 %181  ;;  %v1001_v22 = vmul.f32 %v2081_v61, %v1000_v6  ;;  %v246_v26 = vmul.f32 %v2021_v33, %v244_v8  ;;  %v242_v1 = vadd.f32 %v238_v54, %v1973_v36  ;;  %v248_v36 = vmul.f32 %v2046_v27, %v244_v8 }
  0xac   :  { %v192_v46 = vadd.f32 %v184_v9, %v114_v32  ;;  %v191_v3 = vadd.f32 %v182_v11, %v113_v21  ;;  %v245_v32 = vmul.f32 %v2027_v30, %v244_v8  ;;  %v241_v21 = vadd.f32 %v237_v5, %v1945_v55 }
  0xad   :  { %915 = vrot.lane.b32.xlu1 %v906_v29, %s1618_s30  ;;  %913 = vrot.lane.b32.xlu0 %v905_v41, %s1618_s30  ;;  %v1004_v29 = vmul.f32 %v2089_v56, %v1000_v6  ;;  %v1003_v41 = vmul.f32 %v2094_v4, %v1000_v6  ;;  %v247_v55 = vmul.f32 %v2051_v25, %v244_v8 }
  0xae   :  { %v2072_v60 = vadd.f32 %v223_v19, %v192_v46  ;;  %v2074_v2 = vadd.f32 %v222_v24, %v191_v3  ;;  %v356_v19 = vstv %s2035_s4  ;;  %s2650_s4 = sld [smem:[#allocation2 + $0x49]] }
  0xaf   :  { %v276_v14 = vpop.permute.xlu1 %275  ;;  %v274_v50 = vpop.permute.xlu0 %273  ;;  %v358_v9 = vmul.f32 %v356_v19, %v1737_v38  ;;  %v357_v11 = vmul.f32 %v356_v19, %v1742_v40  ;;  %v360_v6 = vmul.f32 %v356_v19, %v1751_v43  ;;  %v359_v8 = vmul.f32 %v356_v19, %v1756_v44 }
  0xb0   :  { %v286_v15 = vadd.f32 %v276_v14, %v240_v51  ;;  %v285_v17 = vadd.f32 %v274_v50, %v239_v12  ;;  %v366_v50 = vstv %s2096_s19  ;;  %s2285_s19 = sld [smem:[#allocation2 + $0xc]] }
  0xb1   :  { %919 = vrot.lane.b32.xlu1 %v908_v0, %s1618_s30  ;;  %917 = vrot.lane.b32.xlu0 %v907_v49, %s1618_s30  ;;  %v250_v0 = vadd.f32 %v246_v26, %v1993_v47  ;;  %v249_v49 = vadd.f32 %v245_v32, %v1995_v48  ;;  %v368_v19 = vmul.f32 %v366_v50, %v1737_v38 }
  0xb2   :  { %v2104_v34 = vadd.f32 %v348_v45, %v286_v15  ;;  %v2106_v39 = vadd.f32 %v347_v58, %v285_v17  ;;  %v1026_v45 = vstv %s2068_s11  ;;  %v254_v58 = vstv %s2070_s12  ;;  %s2238_s12 = sld [smem:[#allocation2 + $0x3f]]  ;;  %s2585_s11 = sld [smem:[#allocation2 + $0x12]] }
  0xb3   :  { %v280_v28 = vpop.permute.xlu1 %279  ;;  %v278_v24 = vpop.permute.xlu0 %277  ;;  %v1028_v14 = vmul.f32 %v2060_v52, %v1026_v45  ;;  %v1027_v47 = vmul.f32 %v2081_v61, %v1026_v45  ;;  %v256_v48 = vmul.f32 %v2021_v33, %v254_v58  ;;  %v1030_v32 = vmul.f32 %v2089_v56, %v1026_v45 }
  0xb4   :  { %v288_v7 = vadd.f32 %v280_v28, %v242_v1  ;;  %v287_v42 = vadd.f32 %v278_v24, %v241_v21  ;;  %v1029_v21 = vmul.f32 %v2094_v4, %v1026_v45  ;;  %v1052_v28 = vstv %s2120_s20  ;;  %s2308_s20 = sld [smem:[#allocation2 + $0x1a]] }
  0xb5   :  { %1011 = vrot.lane.b32.xlu1 %v1002_v20, %s1618_s30  ;;  %1009 = vrot.lane.b32.xlu0 %v1001_v22, %s1618_s30  ;;  %v251_v20 = vadd.f32 %v247_v55, %v2013_v53  ;;  %v257_v53 = vmul.f32 %v2051_v25, %v254_v58  ;;  %v380_v24 = vstv %s2122_s1  ;;  %v2175_v25 = vld [vmem:[%s3123_s0 + $0x29] sm:$0xff]  ;;  %v1053_v45 = vmul.f32 %v2081_v61, %v1052_v28  ;;  %s2310_s1 = sld [smem:[#allocation2 + $0x25]] }
  0xb6   :  { %v2124_v46 = vadd.f32 %v350_v31, %v288_v7  ;;  %v2126_v3 = vadd.f32 %v349_v13, %v287_v42  ;;  %v255_v31 = vmul.f32 %v2027_v30, %v254_v58  ;;  %v252_v13 = vadd.f32 %v248_v36, %v2011_v35 }
  0xb7   :  { %v302_v54 = vpop.permute.xlu1 %301  ;;  %v300_v5 = vpop.permute.xlu0 %299  ;;  %v367_v30 = vmul.f32 %v366_v50, %v1742_v40  ;;  %v258_v35 = vmul.f32 %v2046_v27, %v254_v58  ;;  %v2170_v27 = vld [vmem:[%s3123_s0 + $0x31] sm:$0xff]  ;;  %v493_v55 = vstv %s2134_s2 }
  0xb8   :  { %v312_v51 = vadd.f32 %v302_v54, %v250_v0  ;;  %v311_v12 = vadd.f32 %v300_v5, %v249_v49  ;;  %v382_v58 = vmul.f32 %v2170_v27, %v380_v24  ;;  %v381_v0 = vmul.f32 %v2175_v25, %v380_v24  ;;  %v2197_v5 = vld [vmem:[%s3123_s0 + $0x41] sm:$0xff] }
  0xb9   :  { %1015 = vrot.lane.b32.xlu1 %v1004_v29, %s1618_s30  ;;  %1013 = vrot.lane.b32.xlu0 %v1003_v41, %s1618_s30  ;;  %v260_v29 = vadd.f32 %v256_v48, %v2037_v37  ;;  %v259_v41 = vadd.f32 %v255_v31, %v2039_v10  ;;  %v1054_v10 = vmul.f32 %v2060_v52, %v1052_v28  ;;  %v2211_v48 = vld [vmem:[%s3123_s0 + $0x198] sm:$0xff] }
  0xba   :  { %v2141_v15 = vadd.f32 %v358_v9, %v312_v51  ;;  %v2143_v17 = vadd.f32 %v357_v11, %v311_v12  ;;  %v370_v9 = vmul.f32 %v366_v50, %v1751_v43  ;;  %v369_v11 = vmul.f32 %v366_v50, %v1756_v44 }
  0xbb   :  { %v306_v22 = vpop.permute.xlu1 %305  ;;  %v304_v26 = vpop.permute.xlu0 %303  ;;  %v262_v49 = vadd.f32 %v258_v35, %v2072_v60  ;;  %v261_v54 = vadd.f32 %v257_v53, %v2074_v2  ;;  %v495_v12 = vmul.f32 %v1781_v57, %v493_v55  ;;  %v494_v60 = vmul.f32 %v1786_v59, %v493_v55 }
  0xbc   :  { %v314_v1 = vadd.f32 %v306_v22, %v252_v13  ;;  %v313_v33 = vadd.f32 %v304_v26, %v251_v20  ;;  %v1056_v50 = vmul.f32 %v2089_v56, %v1052_v28  ;;  %v384_v31 = vmul.f32 %v2197_v5, %v380_v24 }
  0xbd   :  { %1037 = vrot.lane.b32.xlu1 %v1028_v14, %s1618_s30  ;;  %1035 = vrot.lane.b32.xlu0 %v1027_v47, %s1618_s30  ;;  %v1055_v47 = vmul.f32 %v2094_v4, %v1052_v28  ;;  %v1148_v20 = vstv %s2157_s21  ;;  %v390_v22 = vstv %s2159_s22  ;;  %v497_v35 = vmul.f32 %v1795_v62, %v493_v55 }
  0xbe   :  { %v2161_v38 = vadd.f32 %v360_v6, %v314_v1  ;;  %v2163_v40 = vadd.f32 %v359_v8, %v313_v33  ;;  %v2202_v6 = vld [vmem:[%s3123_s0 + $0x39] sm:$0xff]  ;;  %v385_v1 = vadd.f32 %v381_v0, %v2106_v39  ;;  %v2232_v33 = vld [vmem:[%s3123_s0 + $0x190] sm:$0xff]  ;;  %v496_v53 = vmul.f32 %v1800_v63, %v493_v55 }
  0xbf   :  { %v328_v7 = vpop.permute.xlu1 %327  ;;  %v326_v42 = vpop.permute.xlu0 %325  ;;  %v383_v13 = vmul.f32 %v2202_v6, %v380_v24  ;;  %v392_v39 = vmul.f32 %v2170_v27, %v390_v22 }
  0xc0   :  { %v338_v36 = vadd.f32 %v328_v7, %v260_v29  ;;  %v337_v37 = vadd.f32 %v326_v42, %v259_v41  ;;  %v1150_v29 = vmul.f32 %v2211_v48, %v1148_v20  ;;  %v503_v41 = vstv %s2181_s27  ;;  %v2248_v42 = vld [vmem:[%s3123_s0 + $0x1a8] sm:$0xff]  ;;  %s2628_s27 = sld [smem:[#allocation2 + $0x48]] }
  0xc1   :  { %1041 = vrot.lane.b32.xlu1 %v1030_v32, %s1618_s30  ;;  %1039 = vrot.lane.b32.xlu0 %v1029_v21, %s1618_s30  ;;  %v386_v32 = vadd.f32 %v382_v58, %v2104_v34  ;;  %v1149_v34 = vmul.f32 %v2232_v33, %v1148_v20  ;;  %v391_v7 = vmul.f32 %v2175_v25, %v390_v22 }
  0xc2   :  { %v2188_v43 = vadd.f32 %v368_v19, %v338_v36  ;;  %v2190_v44 = vadd.f32 %v367_v30, %v337_v37  ;;  %v388_v37 = vadd.f32 %v384_v31, %v2124_v46  ;;  %v505_v58 = vmul.f32 %v1781_v57, %v503_v41 }
  0xc3   :  { %v332_v8 = vpop.permute.xlu1 %331  ;;  %v330_v51 = vpop.permute.xlu0 %329  ;;  %v504_v0 = vmul.f32 %v1786_v59, %v503_v41  ;;  %v394_v46 = vmul.f32 %v2197_v5, %v390_v22 }
  0xc4   :  { %v340_v14 = vadd.f32 %v332_v8, %v262_v49  ;;  %v339_v2 = vadd.f32 %v330_v51, %v261_v54  ;;  %v1152_v8 = vmul.f32 %v2248_v42, %v1148_v20 }
  0xc5   :  { %1063 = vrot.lane.b32.xlu1 %v1054_v10, %s1618_s30  ;;  %1061 = vrot.lane.b32.xlu0 %v1053_v45, %s1618_s30  ;;  %v387_v10 = vadd.f32 %v383_v13, %v2126_v3  ;;  %v393_v3 = vmul.f32 %v2202_v6, %v390_v22  ;;  %v506_v22 = vmul.f32 %v1800_v63, %v503_v41 }
  0xc6   :  { %v2223_v26 = vadd.f32 %v370_v9, %v340_v14  ;;  %v2225_v19 = vadd.f32 %v369_v11, %v339_v2  ;;  %v2253_v9 = vld [vmem:[%s3123_s0 + $0x1a0] sm:$0xff] }
  0xc7   :  { %v422_v30 = vpop.permute.xlu1 %421  ;;  %v420_v21 = vpop.permute.xlu0 %419  ;;  %v1151_v51 = vmul.f32 %v2253_v9, %v1148_v20  ;;  %v507_v20 = vmul.f32 %v1795_v62, %v503_v41 }
  0xc8   :  { %v432_v28 = vadd.f32 %v422_v30, %v386_v32  ;;  %v431_v24 = vadd.f32 %v420_v21, %v385_v1  ;;  %v513_v21 = vstv %s2238_s12 }
  0xc9   :  { %1067 = vrot.lane.b32.xlu1 %v1056_v50, %s1618_s30  ;;  %1065 = vrot.lane.b32.xlu0 %v1055_v47, %s1618_s30  ;;  %v396_v50 = vadd.f32 %v392_v39, %v2141_v15  ;;  %v395_v47 = vadd.f32 %v391_v7, %v2143_v17  ;;  %v515_v39 = vmul.f32 %v1781_v57, %v513_v21 }
  0xca   :  { %v2255_v11 = vadd.f32 %v495_v12, %v432_v28  ;;  %v2257_v36 = vadd.f32 %v494_v60, %v431_v24  ;;  %v1174_v12 = vstv %s2219_s8  ;;  %v400_v60 = vstv %s2221_s9  ;;  %s2387_s8 = sld [smem:[#allocation2 + $0x35]] }
  0xcb   :  { %v426_v55 = vpop.permute.xlu1 %425  ;;  %v424_v45 = vpop.permute.xlu0 %423  ;;  %v1176_v30 = vmul.f32 %v2211_v48, %v1174_v12  ;;  %v1175_v15 = vmul.f32 %v2232_v33, %v1174_v12  ;;  %v402_v17 = vmul.f32 %v2170_v27, %v400_v60  ;;  %v398_v24 = vadd.f32 %v394_v46, %v2161_v38  ;;  %s1488_s9 = sld [smem:[#allocation2 + $0x45]] }
  0xcc   :  { %v434_v49 = vadd.f32 %v426_v55, %v388_v37  ;;  %v433_v54 = vadd.f32 %v424_v45, %v387_v10  ;;  %v514_v7 = vmul.f32 %v1786_v59, %v513_v21  ;;  %v1177_v10 = vmul.f32 %v2253_v9, %v1174_v12 }
  0xcd   :  { %1159 = vrot.lane.b32.xlu1 %v1150_v29, %s1618_s30  ;;  %1157 = vrot.lane.b32.xlu0 %v1149_v34, %s1618_s30  ;;  %v397_v29 = vadd.f32 %v393_v3, %v2163_v40  ;;  %v404_v38 = vmul.f32 %v2197_v5, %v400_v60  ;;  %v403_v40 = vmul.f32 %v2202_v6, %v400_v60  ;;  %v1200_v55 = vstv %s2271_s17  ;;  %v2321_v5 = vld [vmem:[%s3123_s0 + $0xd0] sm:$0xff] }
  0xce   :  { %v2275_v14 = vadd.f32 %v497_v35, %v434_v49  ;;  %v2277_v2 = vadd.f32 %v496_v53, %v433_v54  ;;  %v401_v35 = vmul.f32 %v2175_v25, %v400_v60  ;;  %v1178_v25 = vmul.f32 %v2248_v42, %v1174_v12  ;;  %v2326_v6 = vld [vmem:[%s3123_s0 + $0xc8] sm:$0xff] }
  0xcf   :  { %v448_v31 = vpop.permute.xlu1 %447  ;;  %v446_v13 = vpop.permute.xlu0 %445  ;;  %v528_v45 = vstv %s2273_s18  ;;  %v2332_v3 = vstv %s2285_s19  ;;  %v1201_v12 = vmul.f32 %v2232_v33, %v1200_v55  ;;  %s2768_s19 = sld [smem:[#allocation2 + $0x4c]] }
  0xd0   :  { %v458_v32 = vadd.f32 %v448_v31, %v396_v50  ;;  %v457_v1 = vadd.f32 %v446_v13, %v395_v47  ;;  %v530_v60 = vmul.f32 %v2321_v5, %v528_v45  ;;  %v529_v50 = vmul.f32 %v2326_v6, %v528_v45  ;;  %v2350_v13 = vld [vmem:[%s3123_s0 + $0xe0] sm:$0xff] }
  0xd1   :  { %1163 = vrot.lane.b32.xlu1 %v1152_v8, %s1618_s30  ;;  %1161 = vrot.lane.b32.xlu0 %v1151_v51, %s1618_s30  ;;  %v517_v8 = vmul.f32 %v1795_v62, %v513_v21  ;;  %v516_v51 = vmul.f32 %v1800_v63, %v513_v21  ;;  %v408_v47 = vadd.f32 %v404_v38, %v2223_v26 }
  0xd2   :  { %v2292_v53 = vadd.f32 %v505_v58, %v458_v32  ;;  %v2294_v28 = vadd.f32 %v504_v0, %v457_v1  ;;  %v406_v58 = vadd.f32 %v402_v17, %v2188_v43  ;;  %v405_v0 = vadd.f32 %v401_v35, %v2190_v44  ;;  %v2366_v17 = vld [vmem:[%s3123_s0 + $0x149] sm:$0xff] }
  0xd3   :  { %v452_v41 = vpop.permute.xlu1 %451  ;;  %v450_v34 = vpop.permute.xlu0 %449  ;;  %v1202_v44 = vmul.f32 %v2211_v48, %v1200_v55  ;;  %v407_v31 = vadd.f32 %v403_v40, %v2225_v19  ;;  %v643_v1 = vmul.f32 %v1825_v16, %v2332_v3  ;;  %v642_v26 = vmul.f32 %v1830_v18, %v2332_v3 }
  0xd4   :  { %v460_v37 = vadd.f32 %v452_v41, %v398_v24  ;;  %v459_v27 = vadd.f32 %v450_v34, %v397_v29  ;;  %v1204_v21 = vmul.f32 %v2248_v42, %v1200_v55  ;;  %v532_v35 = vmul.f32 %v2350_v13, %v528_v45 }
  0xd5   :  { %1185 = vrot.lane.b32.xlu1 %v1176_v30, %s1618_s30  ;;  %1183 = vrot.lane.b32.xlu0 %v1175_v15, %s1618_s30  ;;  %v1203_v15 = vmul.f32 %v2253_v9, %v1200_v55  ;;  %v1294_v29 = vstv %s2308_s20  ;;  %v538_v41 = vstv %s2310_s1  ;;  %v645_v55 = vmul.f32 %v1839_v23, %v2332_v3  ;;  %s2601_s1 = sld [smem:[#allocation2 + $0x2d]] }
  0xd6   :  { %v2312_v57 = vadd.f32 %v507_v20, %v460_v37  ;;  %v2314_v59 = vadd.f32 %v506_v22, %v459_v27  ;;  %v2355_v20 = vld [vmem:[%s3123_s0 + $0xd8] sm:$0xff]  ;;  %v533_v37 = vadd.f32 %v529_v50, %v2257_v36  ;;  %v2385_v27 = vld [vmem:[%s3123_s0 + $0x141] sm:$0xff] }
  0xd7   :  { %v474_v49 = vpop.permute.xlu1 %473  ;;  %v472_v54 = vpop.permute.xlu0 %471  ;;  %v531_v24 = vmul.f32 %v2355_v20, %v528_v45  ;;  %3137 = vst [vmem:[#allocation11_spill] sm:$0xff] %v2385_v27  ;;  %v1296_v45 = vmul.f32 %v2366_v17, %v1294_v29  ;;  %v1295_v36 = vmul.f32 %v2385_v27, %v1294_v29 }
  0xd8   :  { %v484_v46 = vadd.f32 %v474_v49, %v406_v58  ;;  %v483_v43 = vadd.f32 %v472_v54, %v405_v0  ;;  %v540_v58 = vmul.f32 %v2321_v5, %v538_v41  ;;  %v2402_v0 = vstv %s2339_s24  ;;  %v2408_v54 = vld [vmem:[%s3123_s0 + $0x151] sm:$0xff]  ;;  %s2496_s24 = sld [smem:[#allocation2 + $0x28]] }
  0xd9   :  { %1189 = vrot.lane.b32.xlu1 %v1178_v25, %s1618_s30  ;;  %1187 = vrot.lane.b32.xlu0 %v1177_v10, %s1618_s30  ;;  %v539_v49 = vmul.f32 %v2326_v6, %v538_v41  ;;  %3139 = vst [vmem:[#allocation13_spill] sm:$0xff] %v2408_v54 }
  0xda   :  { %v2341_v62 = vadd.f32 %v515_v39, %v484_v46  ;;  %v2343_v63 = vadd.f32 %v514_v7, %v483_v43  ;;  %v534_v7 = vadd.f32 %v530_v60, %v2255_v11  ;;  %v2395_v11 = vld [vmem:[%s3123_s0 + $0x159] sm:$0xff]  ;;  %v536_v46 = vadd.f32 %v532_v35, %v2275_v14 }
  0xdb   :  { %v478_v22 = vpop.permute.xlu1 %477  ;;  %v476_v32 = vpop.permute.xlu0 %475  ;;  %3138 = vst [vmem:[#allocation12_spill] sm:$0xff] %v2395_v11  ;;  %v535_v43 = vadd.f32 %v531_v24, %v2277_v2  ;;  %v1298_v60 = vmul.f32 %v2395_v11, %v1294_v29  ;;  %v653_v14 = vmul.f32 %v1825_v16, %v2402_v0  ;;  %v652_v2 = vmul.f32 %v1830_v18, %v2402_v0 }
  0xdc   :  { %v486_v19 = vadd.f32 %v478_v22, %v408_v47  ;;  %v485_v30 = vadd.f32 %v476_v32, %v407_v31  ;;  %v1297_v31 = vmul.f32 %v2408_v54, %v1294_v29  ;;  %v542_v22 = vmul.f32 %v2350_v13, %v538_v41 }
  0xdd   :  { %1211 = vrot.lane.b32.xlu1 %v1202_v44, %s1618_s30  ;;  %1209 = vrot.lane.b32.xlu0 %v1201_v12, %s1618_s30  ;;  %v541_v32 = vmul.f32 %v2355_v20, %v538_v41 }
  0xde   :  { %v2376_v34 = vadd.f32 %v517_v8, %v486_v19  ;;  %v2378_v39 = vadd.f32 %v516_v51, %v485_v30  ;;  %v544_v19 = vadd.f32 %v540_v58, %v2292_v53  ;;  %v543_v30 = vadd.f32 %v539_v49, %v2294_v28  ;;  %v2465_v58 = vld [vmem:[%s3123_s0 + $0x120] sm:$0xff] }
  0xdf   :  { %v570_v25 = vpop.permute.xlu1 %569  ;;  %v568_v10 = vpop.permute.xlu0 %567  ;;  %v655_v53 = vmul.f32 %v1839_v23, %v2402_v0 }
  0xe0   :  { %v580_v38 = vadd.f32 %v570_v25, %v534_v7  ;;  %v579_v40 = vadd.f32 %v568_v10, %v533_v37  ;;  %v2449_v7 = vstv %s2410_s13 }
  0xe1   :  { %1215 = vrot.lane.b32.xlu1 %v1204_v21, %s1618_s30  ;;  %1213 = vrot.lane.b32.xlu0 %v1203_v15, %s1618_s30  ;;  %v1320_v21 = vstv %s2387_s8  ;;  %s1494_s8 = sld [smem:[#allocation2 + $0x2b]] }
  0xe2   :  { %v2412_v8 = vadd.f32 %v643_v1, %v580_v38  ;;  %v2414_v51 = vadd.f32 %v642_v26, %v579_v40  ;;  %v548_v1 = vstv %s2374_s5  ;;  %v1322_v28 = vmul.f32 %v2366_v17, %v1320_v21  ;;  %s1478_s5 = sld [smem:[#allocation2 + $0x43]] }
  0xe3   :  { %v574_v44 = vpop.permute.xlu1 %573  ;;  %v572_v12 = vpop.permute.xlu0 %571  ;;  %v550_v18 = vmul.f32 %v2321_v5, %v548_v1  ;;  %v549_v29 = vmul.f32 %v2326_v6, %v548_v1  ;;  %v1321_v41 = vmul.f32 %v2385_v27, %v1320_v21  ;;  %v546_v5 = vadd.f32 %v542_v22, %v2312_v57  ;;  %v1556_v57 = vld [vmem:[%s3123_s0 + $0xf8] sm:$0xff] }
  0xe4   :  { %v582_v50 = vadd.f32 %v574_v44, %v536_v46  ;;  %v2419_v47 = vadd.f32 %v572_v12, %v535_v43  ;;  %v545_v6 = vadd.f32 %v541_v32, %v2314_v59  ;;  %v552_v40 = vmul.f32 %v2350_v13, %v548_v1  ;;  %v1557_v13 = vld [vmem:[%s3123_s0 + $0xf0] sm:$0xff]  ;;  %v2482_v43 = vld [vmem:[%s3123_s0 + $0x118] sm:$0xff] }
  0xe5   :  { %1305 = vrot.lane.b32.xlu1 %v1296_v45, %s1618_s30  ;;  %1303 = vrot.lane.b32.xlu0 %v1295_v36, %s1618_s30  ;;  %v1324_v45 = vmul.f32 %v2395_v11, %v1320_v21  ;;  %v551_v36 = vmul.f32 %v2355_v20, %v548_v1  ;;  %v663_v59 = vmul.f32 %v1556_v57, %v2449_v7  ;;  %v676_v46 = vstv %s2431_s14  ;;  %s2701_s14 = sld [smem:[#allocation2 + $0x30]] }
  0xe6   :  { %v2433_v26 = vadd.f32 %v645_v55, %v582_v50  ;;  %v662_v20 = vmul.f32 %v1557_v13, %v2449_v7  ;;  %v1323_v49 = vmul.f32 %v2408_v54, %v1320_v21  ;;  %v554_v12 = vadd.f32 %v550_v18, %v2341_v62 }
  0xe7   :  { %v596_v15 = vpop.permute.xlu1 %595  ;;  %v594_v16 = vpop.permute.xlu0 %593  ;;  %v1346_v50 = vstv %s2438_s15  ;;  %v677_v62 = vmul.f32 %v2482_v43, %v676_v46  ;;  %v555_v18 = vadd.f32 %v551_v36, %v2378_v39  ;;  %s2721_s15 = sld [smem:[#allocation2 + $0x31]] }
  0xe8   :  { %v606_v35 = vadd.f32 %v596_v15, %v544_v19  ;;  %v605_v24 = vadd.f32 %v594_v16, %v543_v30  ;;  %v678_v19 = vmul.f32 %v2465_v58, %v676_v46  ;;  %v1348_v30 = vmul.f32 %v2366_v17, %v1346_v50  ;;  %v1475_v15 = vld [vmem:[%s3123_s0 + $0x130] sm:$0xff] }
  0xe9   :  { %1309 = vrot.lane.b32.xlu1 %v1298_v60, %s1618_s30  ;;  %1307 = vrot.lane.b32.xlu0 %v1297_v31, %s1618_s30  ;;  %v553_v60 = vadd.f32 %v549_v29, %v2343_v63  ;;  %v2492_v31 = vld [vmem:[%s3123_s0 + $0x100] sm:$0xff]  ;;  %v1559_v63 = vld [vmem:[%s3123_s0 + $0x108] sm:$0xff]  ;;  %v1347_v21 = vmul.f32 %v2385_v27, %v1346_v50 }
  0xea   :  { %v2451_v37 = vadd.f32 %v653_v14, %v606_v35  ;;  %v2453_v25 = vadd.f32 %v652_v2, %v605_v24  ;;  %v644_v22 = vmul.f32 %v2492_v31, %v2332_v3  ;;  %v665_v3 = vmul.f32 %v1559_v63, %v2449_v7  ;;  %v1474_v29 = vld [vmem:[%s3123_s0 + $0x128] sm:$0xff] }
  0xeb   :  { %v600_v10 = vpop.permute.xlu1 %599  ;;  %v598_v38 = vpop.permute.xlu0 %597  ;;  %v556_v24 = vadd.f32 %v552_v40, %v2376_v34  ;;  %v1349_v34 = vmul.f32 %v2408_v54, %v1346_v50  ;;  %v945_v27 = vstv %s2601_s1 }
  0xec   :  { %v608_v23 = vadd.f32 %v600_v10, %v546_v5  ;;  %v2458_v55 = vadd.f32 %v598_v38, %v545_v6  ;;  %v680_v6 = vmul.f32 %v1475_v15, %v676_v46  ;;  %v1350_v10 = vmul.f32 %v2395_v11, %v1346_v50 }
  0xed   :  { %1331 = vrot.lane.b32.xlu1 %v1322_v28, %s1618_s30  ;;  %1329 = vrot.lane.b32.xlu0 %v1321_v41, %s1618_s30  ;;  %v679_v38 = vmul.f32 %v1474_v29, %v676_v46  ;;  %v648_v39 = vadd.f32 %v644_v22, %v2419_v47 }
  0xee   :  { %v2484_v44 = vadd.f32 %v655_v53, %v608_v23  ;;  %v682_v23 = vadd.f32 %v678_v19, %v2412_v8  ;;  %v684_v47 = vadd.f32 %v680_v6, %v2433_v26  ;;  %v696_v26 = vstv %s1478_s5  ;;  %s2667_s5 = sld [smem:[#allocation2 + $0x15]] }
  0xef   :  { %v622_v14 = vpop.permute.xlu1 %621  ;;  %v620_v2 = vpop.permute.xlu0 %619  ;;  %v683_v8 = vadd.f32 %v679_v38, %v648_v39  ;;  %v699_v38 = vmul.f32 %v1474_v29, %v696_v26 }
  0xf0   :  { %v632_v32 = vadd.f32 %v622_v14, %v554_v12  ;;  %v631_v1 = vadd.f32 %v620_v2, %v553_v60 }
  0xf1   :  { %1335 = vrot.lane.b32.xlu1 %v1324_v45, %s1618_s30  ;;  %1333 = vrot.lane.b32.xlu0 %v1323_v49, %s1618_s30  ;;  %v681_v45 = vadd.f32 %v677_v62, %v2414_v51  ;;  %v654_v49 = vmul.f32 %v2492_v31, %v2402_v0 }
  0xf2   :  { %v667_v16 = vadd.f32 %v663_v59, %v632_v32  ;;  %v666_v35 = vadd.f32 %v662_v20, %v631_v1  ;;  %v686_v59 = vstv %s2496_s24  ;;  %s2617_s24 = sld [smem:[#allocation2 + $0x2e]] }
  0xf3   :  { %v626_v53 = vpop.permute.xlu1 %625  ;;  %v624_v28 = vpop.permute.xlu0 %623  ;;  %v688_v51 = vmul.f32 %v2465_v58, %v686_v59  ;;  %v687_v46 = vmul.f32 %v2482_v43, %v686_v59  ;;  %v690_v14 = vmul.f32 %v1475_v15, %v686_v59  ;;  %v689_v2 = vmul.f32 %v1474_v29, %v686_v59 }
  0xf4   :  { %v634_v41 = vadd.f32 %v626_v53, %v556_v24  ;;  %v633_v5 = vadd.f32 %v624_v28, %v555_v18  ;;  %v658_v0 = vadd.f32 %v654_v49, %v2458_v55  ;;  %v697_v55 = vmul.f32 %v2482_v43, %v696_v26 }
  0xf5   :  { %1357 = vrot.lane.b32.xlu1 %v1348_v30, %s1618_s30  ;;  %1355 = vrot.lane.b32.xlu0 %v1347_v21, %s1618_s30  ;;  %v692_v32 = vadd.f32 %v688_v51, %v2451_v37  ;;  %v691_v1 = vadd.f32 %v687_v46, %v2453_v25  ;;  %v698_v30 = vmul.f32 %v2465_v58, %v696_v26  ;;  %v1490_v46 = vld [vmem:[%s3123_s0 + $0xd1] sm:$0xff] }
  0xf6   :  { %v669_v40 = vadd.f32 %v665_v3, %v634_v41  ;;  %v664_v21 = vmul.f32 %v2492_v31, %v2449_v7  ;;  %v694_v24 = vadd.f32 %v690_v14, %v2484_v44  ;;  %v693_v18 = vadd.f32 %v689_v2, %v658_v0  ;;  %v1492_v14 = vld [vmem:[%s3123_s0 + $0xe1] sm:$0xff]  ;;  %v1491_v2 = vld [vmem:[%s3123_s0 + $0xd9] sm:$0xff] }
  0xf7   :  { %v718_v36 = vpop.permute.xlu1 %717  ;;  %v716_v57 = vpop.permute.xlu0 %715  ;;  %v700_v41 = vmul.f32 %v1475_v15, %v696_v26 }
  0xf8   :  { %v2524_v13 = vadd.f32 %v718_v36, %v682_v23  ;;  %v2526_v20 = vadd.f32 %v716_v57, %v681_v45  ;;  %v668_v6 = vadd.f32 %v664_v21, %v633_v5  ;;  %v1562_v21 = vld [vmem:[%s3123_s0 + $0xb9] sm:$0xff] }
  0xf9   :  { %1361 = vrot.lane.b32.xlu1 %v1350_v10, %s1618_s30  ;;  %1359 = vrot.lane.b32.xlu0 %v1349_v34, %s1618_s30  ;;  %v702_v10 = vadd.f32 %v698_v30, %v667_v16  ;;  %v701_v34 = vadd.f32 %v697_v55, %v666_v35  ;;  %v704_v44 = vadd.f32 %v700_v41, %v669_v40  ;;  %s1486_s30 = sld [smem:[#allocation2 + $0xf]]  ;;  %v798_v30 = vstv %s1487_s7 }
  0xfa   :  { %v703_v31 = vadd.f32 %v699_v38, %v668_v6  ;;  %v808_v6 = vstv %s1488_s9  ;;  %s3053_s9 = sld [smem:[#allocation2 + $0x4f]] }
  0xfb   :  { %v722_v12 = vpop.permute.xlu1 %721  ;;  %v720_v60 = vpop.permute.xlu0 %719 }
  0xfc   :  { %v2535_v50 = vadd.f32 %v722_v12, %v684_v47  ;;  %v2537_v22 = vadd.f32 %v720_v60, %v683_v8  ;;  %v822_v12 = vstv %s1493_s6  ;;  %v1489_v60 = vld [vmem:[%s3123_s0 + $0xc9] sm:$0xff] }
  0xfd   :  { %v2626_v55 = vmul.f32 %v1489_v60, %v822_v12 }
  0xff   :  { %v744_v19 = vpop.permute.xlu1 %743  ;;  %v742_v62 = vpop.permute.xlu0 %741  ;;  %v788_v51 = vstv %s1486_s30  ;;  %s2669_s30 = sld [smem:[#allocation2 + $0x16]] }
 0x100   :  { %v2542_v63 = vadd.f32 %v744_v19, %v692_v32  ;;  %v2544_v3 = vadd.f32 %v742_v62, %v691_v1  ;;  %v1560_v1 = vld [vmem:[%s3123_s0 + $0xa9] sm:$0xff]  ;;  %v1561_v19 = vld [vmem:[%s3123_s0 + $0xa1] sm:$0xff] }
 0x101   :  { %v2610_v26 = vmul.f32 %v1560_v1, %v788_v51  ;;  %v2615_v62 = vmul.f32 %v1561_v19, %v788_v51  ;;  %v2639_v38 = vmul.f32 %v1560_v1, %v798_v30  ;;  %v2662_v54 = vmul.f32 %v1561_v19, %v808_v6 }
 0x103   :  { %v748_v37 = vpop.permute.xlu1 %747  ;;  %v746_v53 = vpop.permute.xlu0 %745 }
 0x104   :  { %v2551_v25 = vadd.f32 %v748_v37, %v694_v24  ;;  %v2553_v28 = vadd.f32 %v746_v53, %v693_v18  ;;  %v2622_v24 = vmul.f32 %v1562_v21, %v788_v51  ;;  %v2624_v18 = vmul.f32 %v1490_v46, %v822_v12  ;;  %v1563_v53 = vld [vmem:[%s3123_s0 + $0xb1] sm:$0xff] }
 0x105   :  { %v832_v37 = vstv %s1494_s8  ;;  %v2633_v41 = vmul.f32 %v1563_v53, %v788_v51  ;;  %v2684_v11 = vmul.f32 %v1563_v53, %v808_v6  ;;  %s2973_s8 = sld [smem:[#allocation2 + $0x34]] }
 0x106   :  { %v2654_v51 = vmul.f32 %v1490_v46, %v832_v37 }
 0x107   :  { %v770_v58 = vpop.permute.xlu1 %769  ;;  %v768_v39 = vpop.permute.xlu0 %767  ;;  %3155 = vst [vmem:[#allocation29_spill] sm:$0xff] %v2684_v11  ;;  %v2727_v11 = vmul.f32 %v2081_v61, %v945_v27 }
 0x108   :  { %v2555_v23 = vadd.f32 %v770_v58, %v702_v10  ;;  %v2557_v7 = vadd.f32 %v768_v39, %v701_v34  ;;  %v2635_v10 = vmul.f32 %v1492_v14, %v822_v12  ;;  %v2637_v34 = vmul.f32 %v1491_v2, %v822_v12 }
 0x109   :  { %v2641_v58 = vmul.f32 %v1561_v19, %v798_v30  ;;  %v2643_v39 = vmul.f32 %v1562_v21, %v798_v30  ;;  %v2656_v12 = vmul.f32 %v1489_v60, %v832_v37  ;;  %v970_v19 = vstv %s2593_s16  ;;  %3161 = vst [vmem:[#allocation35_spill] sm:$0xff] %v2727_v11  ;;  %s2733_s16 = sld [smem:[#allocation2 + $0x4b]] }
 0x10a   :  { %v990_v11 = vstv %s2650_s4 }
 0x10b   :  { %v774_v43 = vpop.permute.xlu1 %773  ;;  %v772_v45 = vpop.permute.xlu0 %771 }
 0x10c   :  { %v2559_v36 = vadd.f32 %v774_v43, %v704_v44  ;;  %v2561_v57 = vadd.f32 %v772_v45, %v703_v31  ;;  %v842_v44 = vstv %s2579_s10  ;;  %v2652_v45 = vmul.f32 %v1563_v53, %v798_v30  ;;  %s1619_s10 = smov [#allocation7]  }
 0x10d   :  { %v2671_v30 = vmul.f32 %v1562_v21, %v808_v6  ;;  %v2687_v21 = vmul.f32 %v1492_v14, %v842_v44 }
 0x10e   :  { %3140 = vst [vmem:[#allocation14_spill] sm:$0xff] %v2559_v36  ;;  %3141 = vst [vmem:[#allocation15_spill] sm:$0xff] %v2561_v57  ;;  %v2673_v57 = vmul.f32 %v1490_v46, %v842_v44  ;;  %v2675_v36 = vmul.f32 %v1489_v60, %v842_v44  ;;  %v2689_v46 = vmul.f32 %v1491_v2, %v842_v44  ;;  %v1509_v60 = vld [vmem:[%s3123_s0 + $0x180] sm:$0xff] }
 0x10f   :  { %v2563_v59 = vpop.permute.xlu1 %863  ;;  %v2565_v15 = vpop.permute.xlu0 %861  ;;  %3152 = vst [vmem:[#allocation26_spill] sm:$0xff] %v2671_v30  ;;  %3156 = vst [vmem:[#allocation30_spill] sm:$0xff] %v2687_v21 }
 0x110   :  { %3153 = vst [vmem:[#allocation27_spill] sm:$0xff] %v2673_v57  ;;  %3154 = vst [vmem:[#allocation28_spill] sm:$0xff] %v2675_v36  ;;  %v1508_v36 = vld [vmem:[%s3123_s0 + $0x178] sm:$0xff] }
 0x111   :  { %3157 = vst [vmem:[#allocation31_spill] sm:$0xff] %v2689_v46  ;;  %v955_v46 = vstv %s2628_s27 }
 0x113   :  { %v2567_v16 = vpop.permute.xlu1 %867  ;;  %v2569_v35 = vpop.permute.xlu0 %865 }
 0x117   :  { %v2571_v29 = vpop.permute.xlu1 %889  ;;  %v2573_v5 = vpop.permute.xlu0 %887 }
 0x118   :  { %3142 = vst [vmem:[#allocation16_spill] sm:$0xff] %v2571_v29  ;;  %3143 = vst [vmem:[#allocation17_spill] sm:$0xff] %v2573_v5  ;;  %v2748_v29 = vmul.f32 %v2094_v4, %v945_v27 }
 0x11b   :  { %v2575_v40 = vpop.permute.xlu1 %893  ;;  %v2577_v49 = vpop.permute.xlu0 %891 }
 0x11c   :  { %3144 = vst [vmem:[#allocation18_spill] sm:$0xff] %v2575_v40  ;;  %3145 = vst [vmem:[#allocation19_spill] sm:$0xff] %v2577_v49 }
 0x11f   :  { %v2581_v47 = vpop.permute.xlu1 %915  ;;  %v2583_v8 = vpop.permute.xlu0 %913 }
 0x120   :  { %3146 = vst [vmem:[#allocation20_spill] sm:$0xff] %v2581_v47  ;;  %3147 = vst [vmem:[#allocation21_spill] sm:$0xff] %v2583_v8  ;;  %v935_v8 = vstv %s2585_s11  ;;  %v2665_v47 = vmul.f32 %v1491_v2, %v832_v37  ;;  %s1391_s11 = sshll.u32 %s1619_s10, 4  ;;  %s1392_s11 = int_to_ptr.vmem [resolvable:$true] %s1391_s11 }
 0x121   :  { %v2704_v53 = vmul.f32 %v2060_v52, %v935_v8  ;;  %v2710_v2 = vmul.f32 %v2089_v56, %v935_v8  ;;  %v2714_v44 = vmul.f32 %v2094_v4, %v935_v8  ;;  %s1588_s12 = scalar_lea.vmem %s1392_s11, 1536  ;;  %p1593_p11 = scmp.lt.s32.totalorder %s1392_s11, %s1392_s11 }
 0x122   :  { %p1589_p10 = scmp.ne.s32.totalorder %s1392_s11, %s1588_s12  ;;  %p1594_p12 = scmp.lt.s32.totalorder %s1588_s12, %s1588_s12 }
 0x123   :  { %v2603_v0 = vpop.permute.xlu1 %919  ;;  %v2605_v32 = vpop.permute.xlu0 %917 }
 0x124   :  { %3148 = vst [vmem:[#allocation22_spill] sm:$0xff] %v2603_v0  ;;  %3149 = vst [vmem:[#allocation23_spill] sm:$0xff] %v2605_v32  ;;  %v2658_v32 = vmul.f32 %v1492_v14, %v832_v37  ;;  %v2660_v0 = vmul.f32 %v1560_v1, %v808_v6  ;;  %v1507_v1 = vld [vmem:[%s3123_s0 + $0x170] sm:$0xff]  ;;  %v1506_v37 = vld [vmem:[%s3123_s0 + $0x168] sm:$0xff]  ;;  %v2707_v14 = vmul.f32 %v2081_v61, %v935_v8  ;;  %v980_v6 = vstv %s2617_s24  ;;  %s2810_s24 = sld [smem:[#allocation2 + $0x18]]  ;;  %p1595_p13 = por %p1594_p12, %p1593_p11 }
 0x125   :  { %v2717_v21 = vmul.f32 %v1507_v1, %v970_v19  ;;  %v2736_v8 = vmul.f32 %v2089_v56, %v945_v27  ;;  %v2738_v49 = vmul.f32 %v1507_v1, %v980_v6  ;;  %v2742_v5 = vmul.f32 %v1506_v37, %v980_v6 }
 0x126   :  { %p1596_p0 = pnand %p1595_p13, %p1589_p10 }
 0x127   :  { %v2646_v31 = vpop.permute.xlu1 %1011  ;;  %v2648_v43 = vpop.permute.xlu0 %1009  ;;  %3164 = vst [vmem:[#allocation38_spill] sm:$0xff] %v2738_v49  ;;  %3166 = vst [vmem:[#allocation40_spill] sm:$0xff] %v2742_v5  ;;  %v2758_v49 = vmul.f32 %v2081_v61, %v955_v46  ;;  %v1083_v5 = vstv %s2667_s5  ;;  %v2777_v61 = vmul.f32 %v1509_v60, %v990_v11 }
 0x128   :  { %3150 = vst [vmem:[#allocation24_spill] sm:$0xff] %v2646_v31  ;;  %3151 = vst [vmem:[#allocation25_spill] sm:$0xff] %v2648_v43  ;;  %v2729_v43 = vmul.f32 %v1509_v60, %v970_v19  ;;  %v2731_v31 = vmul.f32 %v1508_v36, %v970_v19 }
 0x129   :  { %3169 = vst [vmem:[#allocation43_spill] sm:$0xff] %v2758_v49  ;;  %3174 = vst [vmem:[#allocation48_spill] sm:$0xff] %v2777_v61  ;;  %v794_v49 = vadd.f32 %v2610_v26, %v2524_v13  ;;  %v1525_v61 = vld [vmem:[%s3123_s0 + $0x1c8] sm:$0xff]  ;;  %v2803_v13 = vmul.f32 %v2232_v33, %v1083_v5 }
 0x12a   :  { %3162 = vst [vmem:[#allocation36_spill] sm:$0xff] %v2729_v43  ;;  %3163 = vst [vmem:[#allocation37_spill] sm:$0xff] %v2731_v31  ;;  %v2753_v31 = vmul.f32 %v1509_v60, %v980_v6  ;;  %v2755_v43 = vmul.f32 %v1508_v36, %v980_v6  ;;  %v2775_v6 = vmul.f32 %v1506_v37, %v990_v11 }
 0x12b   :  { %v2694_v30 = vpop.permute.xlu1 %1015  ;;  %v2699_v57 = vpop.permute.xlu0 %1013  ;;  %v2794_v60 = vmul.f32 %v1508_v36, %v990_v11 }
 0x12c   :  { %3158 = vst [vmem:[#allocation32_spill] sm:$0xff] %v2694_v30  ;;  %3159 = vst [vmem:[#allocation33_spill] sm:$0xff] %v2699_v57  ;;  %v2719_v57 = vmul.f32 %v1506_v37, %v970_v19  ;;  %v2724_v30 = vmul.f32 %v2060_v52, %v945_v27  ;;  %v2751_v19 = vmul.f32 %v2060_v52, %v955_v46  ;;  %v1524_v27 = vld [vmem:[%s3123_s0 + $0x1c0] sm:$0xff] }
 0x12d   :  { %v2771_v52 = vmul.f32 %v2094_v4, %v955_v46  ;;  %3173 = vst [vmem:[#allocation47_spill] sm:$0xff] %v2775_v6  ;;  %v793_v4 = vadd.f32 %v2615_v62, %v2526_v20  ;;  %3177 = vst [vmem:[#allocation51_spill] sm:$0xff] %v2794_v60  ;;  %v2806_v20 = vmul.f32 %v2248_v42, %v1083_v5  ;;  %v1128_v60 = vstv %s2721_s15 }
 0x12e   :  { %3160 = vst [vmem:[#allocation34_spill] sm:$0xff] %v2724_v30  ;;  %3168 = vst [vmem:[#allocation42_spill] sm:$0xff] %v2751_v19  ;;  %v2773_v19 = vmul.f32 %v1507_v1, %v990_v11  ;;  %v1093_v1 = vstv %s2701_s14  ;;  %v2813_v11 = vmul.f32 %v2253_v9, %v1083_v5 }
 0x12f   :  { %v2740_v40 = vpop.permute.xlu1 %1037  ;;  %v2744_v30 = vpop.permute.xlu0 %1035  ;;  %3171 = vst [vmem:[#allocation45_spill] sm:$0xff] %v2771_v52  ;;  %v2800_v52 = vmul.f32 %v2211_v48, %v1083_v5  ;;  %3178 = vst [vmem:[#allocation52_spill] sm:$0xff] %v2806_v20  ;;  %v2821_v6 = vmul.f32 %v2211_v48, %v1093_v1  ;;  %v796_v20 = vadd.f32 %v2622_v24, %v2535_v50 }
 0x130   :  { %3165 = vst [vmem:[#allocation39_spill] sm:$0xff] %v2740_v40  ;;  %3167 = vst [vmem:[#allocation41_spill] sm:$0xff] %v2744_v30  ;;  %v2761_v40 = vmul.f32 %v2089_v56, %v955_v46  ;;  %v1118_v30 = vstv %s2669_s30  ;;  %v1523_v56 = vld [vmem:[%s3123_s0 + $0x1b8] sm:$0xff]  ;;  %v795_v5 = vadd.f32 %v2633_v41, %v2537_v22  ;;  %v2847_v50 = vmul.f32 %v1524_v27, %v1128_v60 }
 0x131   :  { %3172 = vst [vmem:[#allocation46_spill] sm:$0xff] %v2773_v19  ;;  %v2808_v26 = vmul.f32 %v1524_v27, %v1118_v30  ;;  %3179 = vst [vmem:[#allocation53_spill] sm:$0xff] %v2813_v11  ;;  %v2815_v36 = vmul.f32 %v1523_v56, %v1118_v30  ;;  %v2824_v19 = vmul.f32 %v2232_v33, %v1093_v1 }
 0x132   :  { %3170 = vst [vmem:[#allocation44_spill] sm:$0xff] %v2761_v40  ;;  %v1526_v40 = vld [vmem:[%s3123_s0 + $0x1d0] sm:$0xff]  ;;  %3182 = vst [vmem:[#allocation56_spill] sm:$0xff] %v2821_v6  ;;  %v828_v11 = vadd.f32 %v2624_v18, %v794_v49  ;;  %v2849_v24 = vmul.f32 %v1523_v56, %v1128_v60 }
 0x133   :  { %v2790_v37 = vpop.permute.xlu1 %1041  ;;  %v2792_v46 = vpop.permute.xlu0 %1039  ;;  %3180 = vst [vmem:[#allocation54_spill] sm:$0xff] %v2815_v36  ;;  %v2817_v62 = vmul.f32 %v1526_v40, %v1118_v30  ;;  %3183 = vst [vmem:[#allocation57_spill] sm:$0xff] %v2824_v19  ;;  %v2842_v19 = vmul.f32 %v2248_v42, %v1093_v1  ;;  %v2853_v18 = vmul.f32 %v1526_v40, %v1128_v60 }
 0x134   :  { %3175 = vst [vmem:[#allocation49_spill] sm:$0xff] %v2790_v37  ;;  %3176 = vst [vmem:[#allocation50_spill] sm:$0xff] %v2792_v46  ;;  %v1103_v46 = vstv %s2733_s16  ;;  %v2827_v37 = vmul.f32 %v1525_v61, %v1118_v30  ;;  %v2845_v30 = vmul.f32 %v2253_v9, %v1093_v1  ;;  %v874_v22 = vadd.f32 %v2563_v59, %v828_v11 }
 0x135   :  { %3181 = vst [vmem:[#allocation55_spill] sm:$0xff] %v2817_v62  ;;  %v827_v62 = vadd.f32 %v2626_v55, %v793_v4  ;;  %3184 = vst [vmem:[#allocation58_spill] sm:$0xff] %v2847_v50  ;;  %v1138_v55 = vstv %s2768_s19  ;;  %v2857_v41 = vmul.f32 %v2211_v48, %v1103_v46  ;;  %v2860_v4 = vmul.f32 %v2232_v33, %v1103_v46 }
 0x136   :  { %3185 = vst [vmem:[#allocation59_spill] sm:$0xff] %v2853_v18  ;;  %v2863_v1 = vmul.f32 %v2248_v42, %v1103_v46  ;;  %v2865_v50 = vmul.f32 %v1525_v61, %v1128_v60  ;;  %v804_v59 = vadd.f32 %v2639_v38, %v2542_v63  ;;  %v830_v11 = vadd.f32 %v2635_v10, %v796_v20 }
 0x137   :  { %v2835_v36 = vpop.permute.xlu1 %1063  ;;  %v2837_v6 = vpop.permute.xlu0 %1061  ;;  %v873_v49 = vadd.f32 %v2565_v15, %v827_v62  ;;  %v803_v15 = vadd.f32 %v2641_v58, %v2544_v3  ;;  %v829_v62 = vadd.f32 %v2637_v34, %v795_v5  ;;  %v806_v33 = vadd.f32 %v2643_v39, %v2551_v25  ;;  %v3196_v5 = vld [vmem:[#allocation24_spill] sm:$0xff] }
 0x138   :  { %3186 = vst [vmem:[#allocation60_spill] sm:$0xff] %v2863_v1  ;;  %v805_v42 = vadd.f32 %v2652_v45, %v2553_v28  ;;  %v1230_v60 = vstv %s2810_s24  ;;  %v2882_v63 = vmul.f32 %v1524_v27, %v1138_v55  ;;  %v941_v3 = vadd.f32 %v2704_v53, %v874_v22  ;;  %v3220_v1 = vld [vmem:[#allocation40_spill] sm:$0xff] }
 0x139   :  { %v940_v10 = vadd.f32 %v2707_v14, %v873_v49  ;;  %v876_v34 = vadd.f32 %v2567_v16, %v830_v11  ;;  %v875_v38 = vadd.f32 %v2569_v35, %v829_v62  ;;  %v2889_v58 = vmul.f32 %v2253_v9, %v1103_v46  ;;  %v3197_v49 = vld [vmem:[#allocation25_spill] sm:$0xff]  ;;  %v3199_v11 = vld [vmem:[#allocation12_spill] sm:$0xff] }
 0x13a   :  { %3187 = vst [vmem:[#allocation61_spill] sm:$0xff] %v2882_v63  ;;  %v2891_v20 = vmul.f32 %v1523_v56, %v1138_v55  ;;  %v2893_v25 = vmul.f32 %v1526_v40, %v1138_v55  ;;  %v2895_v28 = vmul.f32 %v1525_v61, %v1138_v55  ;;  %v838_v39 = vadd.f32 %v2654_v51, %v804_v59  ;;  %v3198_v59 = vld [vmem:[#allocation11_spill] sm:$0xff] }
 0x13b   :  { %v2873_v48 = vpop.permute.xlu1 %1067  ;;  %v2875_v18 = vpop.permute.xlu0 %1065  ;;  %3188 = vst [vmem:[#allocation62_spill] sm:$0xff] %v2889_v58  ;;  %v837_v45 = vadd.f32 %v2656_v12, %v803_v15  ;;  %v2900_v53 = vmul.f32 %v2366_v17, %v1230_v60  ;;  %v1264_v35 = vstv %s2839_s25  ;;  %v814_v9 = vadd.f32 %v2660_v0, %v2555_v23  ;;  %v2922_v23 = vld [vmem:[%s3123_s0 + $0x171] sm:$0xff] }
 0x13c   :  { %3189 = vst [vmem:[#allocation63_spill] sm:$0xff] %v2891_v20  ;;  %3190 = vst [vmem:[#allocation64_spill] sm:$0xff] %v2893_v25  ;;  %v813_v40 = vadd.f32 %v2662_v54, %v2557_v7  ;;  %v840_v27 = vadd.f32 %v2658_v32, %v806_v33  ;;  %v839_v51 = vadd.f32 %v2665_v47, %v805_v42  ;;  %v2927_v54 = vld [vmem:[%s3123_s0 + $0x169] sm:$0xff]  ;;  %v3222_v20 = vld [vmem:[#allocation43_spill] sm:$0xff] }
 0x13d   :  { %3191 = vst [vmem:[#allocation65_spill] sm:$0xff] %v2895_v28  ;;  %v943_v12 = vadd.f32 %v2710_v2, %v876_v34  ;;  %v942_v61 = vadd.f32 %v2714_v44, %v875_v38  ;;  %v976_v56 = vadd.f32 %v2717_v21, %v941_v3  ;;  %v975_v46 = vadd.f32 %v2719_v57, %v940_v10  ;;  %v3192_v7 = vld [vmem:[#allocation16_spill] sm:$0xff]  ;;  %v3193_v0 = vld [vmem:[#allocation17_spill] sm:$0xff]  ;;  %v3194_v2 = vld [vmem:[#allocation18_spill] sm:$0xff] }
 0x13e   :  { %v900_v47 = vadd.f32 %v3192_v7, %v838_v39  ;;  %v899_v32 = vadd.f32 %v3193_v0, %v837_v45  ;;  %v902_v21 = vadd.f32 %v3194_v2, %v840_v27  ;;  %v3195_v44 = vld [vmem:[#allocation19_spill] sm:$0xff]  ;;  %v2936_v15 = vmul.f32 %v3198_v59, %v1230_v60  ;;  %v3201_v34 = vld [vmem:[#allocation28_spill] sm:$0xff]  ;;  %v3202_v27 = vld [vmem:[#allocation14_spill] sm:$0xff] }
 0x13f   :  { %v2902_v14 = vpop.permute.xlu1 %1159  ;;  %v2904_v16 = vpop.permute.xlu0 %1157  ;;  %v901_v57 = vadd.f32 %v3195_v44, %v839_v51  ;;  %v1022_v22 = vadd.f32 %v3196_v5, %v976_v56  ;;  %v1021_v55 = vadd.f32 %v3197_v49, %v975_v46  ;;  %v2939_v62 = vmul.f32 %v3199_v11, %v1230_v60  ;;  %v3200_v3 = vld [vmem:[#allocation27_spill] sm:$0xff]  ;;  %v3203_v51 = vld [vmem:[#allocation26_spill] sm:$0xff]  ;;  %v3205_v7 = vld [vmem:[#allocation29_spill] sm:$0xff] }
 0x140   :  { %v848_v10 = vadd.f32 %v3200_v3, %v814_v9  ;;  %v847_v38 = vadd.f32 %v3201_v34, %v813_v40  ;;  %v2948_v39 = vmul.f32 %v2922_v23, %v1264_v35  ;;  %v2951_v45 = vmul.f32 %v2927_v54, %v1264_v35  ;;  %v3204_v46 = vld [vmem:[#allocation15_spill] sm:$0xff]  ;;  %v3206_v2 = vld [vmem:[#allocation36_spill] sm:$0xff]  ;;  %v3207_v5 = vld [vmem:[#allocation37_spill] sm:$0xff] }
 0x141   :  { %v816_v56 = vadd.f32 %v3203_v51, %v3202_v27  ;;  %v815_v0 = vadd.f32 %v3205_v7, %v3204_v46  ;;  %v978_v44 = vadd.f32 %v3206_v2, %v943_v12  ;;  %v977_v49 = vadd.f32 %v3207_v5, %v942_v61  ;;  %v2962_v9 = vld [vmem:[%s3123_s0 + $0x181] sm:$0xff]  ;;  %v3208_v40 = vld [vmem:[#allocation34_spill] sm:$0xff]  ;;  %v3212_v46 = vld [vmem:[#allocation21_spill] sm:$0xff] }
 0x142   :  { %v951_v3 = vadd.f32 %v3208_v40, %v900_v47  ;;  %v3209_v34 = vld [vmem:[#allocation35_spill] sm:$0xff]  ;;  %v953_v25 = vadd.f32 %v2736_v8, %v902_v21  ;;  %v952_v27 = vadd.f32 %v2748_v29, %v901_v57  ;;  %v3211_v61 = vld [vmem:[#allocation20_spill] sm:$0xff]  ;;  %v925_v7 = vadd.f32 %v3212_v46, %v847_v38  ;;  %v3214_v57 = vld [vmem:[#allocation33_spill] sm:$0xff] }
 0x143   :  { %v2941_v33 = vpop.permute.xlu1 %1163  ;;  %v2943_v42 = vpop.permute.xlu0 %1161  ;;  %v950_v28 = vadd.f32 %v3209_v34, %v899_v32  ;;  %v2971_v12 = vld [vmem:[%s3123_s0 + $0x179] sm:$0xff]  ;;  %v926_v51 = vadd.f32 %v3211_v61, %v848_v10  ;;  %v1089_v47 = vadd.f32 %v2800_v52, %v1022_v22  ;;  %v1088_v32 = vadd.f32 %v2803_v13, %v1021_v55  ;;  %v3213_v29 = vld [vmem:[#allocation32_spill] sm:$0xff]  ;;  %v3215_v40 = vld [vmem:[#allocation13_spill] sm:$0xff]  ;;  %s3037_s0 = sld [smem:[#allocation2 + $0x4e]] }
 0x144   :  { %3210 = vst [vmem:[#allocation16_spill] sm:$0xff] %v2971_v12  ;;  %v1024_v21 = vadd.f32 %v3213_v29, %v978_v44  ;;  %v1023_v5 = vadd.f32 %v3214_v57, %v977_v49  ;;  %v2986_v34 = vmul.f32 %v3215_v40, %v1230_v60  ;;  %v2989_v58 = vmul.f32 %v2962_v9, %v1264_v35  ;;  %v3216_v10 = vld [vmem:[#allocation30_spill] sm:$0xff]  ;;  %v3217_v61 = vld [vmem:[#allocation31_spill] sm:$0xff] }
 0x145   :  { %v850_v38 = vadd.f32 %v3216_v10, %v816_v56  ;;  %v849_v52 = vadd.f32 %v3217_v61, %v815_v0  ;;  %v1240_v22 = vstv %s2917_s26  ;;  %v2995_v13 = vmul.f32 %v2971_v12, %v1264_v35  ;;  %v3219_v55 = vld [vmem:[#allocation38_spill] sm:$0xff]  ;;  %v3224_v12 = vld [vmem:[#allocation52_spill] sm:$0xff] }
 0x146   :  { %v986_v46 = vadd.f32 %v3219_v55, %v951_v3  ;;  %v985_v44 = vadd.f32 %v3220_v1, %v950_v28  ;;  %v988_v49 = vadd.f32 %v2753_v31, %v953_v25  ;;  %v987_v60 = vadd.f32 %v2755_v43, %v952_v27  ;;  %v3221_v29 = vld [vmem:[#allocation42_spill] sm:$0xff]  ;;  %v3225_v3 = vld [vmem:[#allocation53_spill] sm:$0xff]  ;;  %v3226_v1 = vld [vmem:[#allocation39_spill] sm:$0xff] }
 0x147   :  { %v2979_v2 = vpop.permute.xlu1 %1185  ;;  %v2981_v8 = vpop.permute.xlu0 %1183  ;;  %3218 = vst [vmem:[#allocation17_spill] sm:$0xff] %v2995_v13  ;;  %v961_v57 = vadd.f32 %v3221_v29, %v926_v51  ;;  %v960_v63 = vadd.f32 %v3222_v20, %v925_v7  ;;  %v1124_v56 = vadd.f32 %v2808_v26, %v1089_v47  ;;  %v3223_v0 = vld [vmem:[#allocation54_spill] sm:$0xff]  ;;  %v1091_v13 = vadd.f32 %v3224_v12, %v1024_v21  ;;  %v3227_v31 = vld [vmem:[#allocation41_spill] sm:$0xff]  ;;  %v3229_v51 = vld [vmem:[#allocation23_spill] sm:$0xff] }
 0x148   :  { %v1123_v10 = vadd.f32 %v3223_v0, %v1088_v32  ;;  %v1090_v55 = vadd.f32 %v3225_v3, %v1023_v5  ;;  %v1048_v28 = vadd.f32 %v3226_v1, %v986_v46  ;;  %v1047_v25 = vadd.f32 %v3227_v31, %v985_v44  ;;  %v3228_v43 = vld [vmem:[#allocation22_spill] sm:$0xff]  ;;  %v3230_v21 = vld [vmem:[#allocation49_spill] sm:$0xff] }
 0x149   :  { %v928_v27 = vadd.f32 %v3228_v43, %v850_v38  ;;  %v927_v29 = vadd.f32 %v3229_v51, %v849_v52  ;;  %v1170_v20 = vadd.f32 %v2902_v14, %v1124_v56  ;;  %v1242_v7 = vmul.f32 %v2366_v17, %v1240_v22  ;;  %v3231_v46 = vld [vmem:[#allocation50_spill] sm:$0xff]  ;;  %v3233_v52 = vld [vmem:[#allocation47_spill] sm:$0xff]  ;;  %v3234_v56 = vld [vmem:[#allocation56_spill] sm:$0xff] }
 0x14a   :  { %v1169_v26 = vadd.f32 %v2904_v16, %v1123_v10  ;;  %v1241_v47 = vmul.f32 %v3198_v59, %v1240_v22  ;;  %v3016_v12 = vmul.f32 %v3199_v11, %v1240_v22  ;;  %v3019_v32 = vstv %s2973_s8  ;;  %v3232_v38 = vld [vmem:[#allocation46_spill] sm:$0xff]  ;;  %v3235_v1 = vld [vmem:[#allocation57_spill] sm:$0xff]  ;;  %v3236_v43 = vld [vmem:[#allocation55_spill] sm:$0xff] }
 0x14b   :  { %v1190_v61 = vpop.permute.xlu1 %1189  ;;  %v1188_v35 = vpop.permute.xlu0 %1187  ;;  %v1050_v5 = vadd.f32 %v3230_v21, %v988_v49  ;;  %v1049_v44 = vadd.f32 %v3231_v46, %v987_v60  ;;  %v996_v0 = vadd.f32 %v3232_v38, %v961_v57  ;;  %v995_v3 = vadd.f32 %v3233_v52, %v960_v63  ;;  %v3237_v59 = vld [vmem:[#allocation44_spill] sm:$0xff]  ;;  %v3238_v21 = vld [vmem:[#allocation45_spill] sm:$0xff]  ;;  %v3242_v52 = vld [vmem:[#allocation59_spill] sm:$0xff] }
 0x14c   :  { %v1099_v10 = vadd.f32 %v3234_v56, %v1048_v28  ;;  %v1098_v31 = vadd.f32 %v3235_v1, %v1047_v25  ;;  %v1126_v51 = vadd.f32 %v3236_v43, %v1091_v13  ;;  %v1125_v11 = vadd.f32 %v2827_v37, %v1090_v55 }
 0x14d   :  { %v963_v49 = vadd.f32 %v3237_v59, %v928_v27  ;;  %v962_v60 = vadd.f32 %v3238_v21, %v927_v29  ;;  %v1236_v57 = vadd.f32 %v2900_v53, %v1170_v20  ;;  %v1235_v63 = vadd.f32 %v2936_v15, %v1169_v26  ;;  %v3245_v21 = vld [vmem:[#allocation63_spill] sm:$0xff] }
 0x14e   :  { %v1172_v46 = vadd.f32 %v2941_v33, %v1126_v51  ;;  %v1171_v28 = vadd.f32 %v2943_v42, %v1125_v11  ;;  %v1276_v25 = vmul.f32 %v2922_v23, %v3019_v32  ;;  %v1275_v37 = vmul.f32 %v2927_v54, %v3019_v32  ;;  %v3239_v11 = vld [vmem:[#allocation58_spill] sm:$0xff] }
 0x14f   :  { %v3025_v14 = vpop.permute.xlu1 %1211  ;;  %v3027_v16 = vpop.permute.xlu0 %1209  ;;  %v1101_v59 = vadd.f32 %v2842_v19, %v1050_v5  ;;  %v1100_v13 = vadd.f32 %v2845_v30, %v1049_v44  ;;  %v1074_v53 = vadd.f32 %v2835_v36, %v996_v0  ;;  %v1073_v15 = vadd.f32 %v2837_v6, %v995_v3  ;;  %v3240_v19 = vld [vmem:[#allocation48_spill] sm:$0xff]  ;;  %v3241_v30 = vld [vmem:[#allocation51_spill] sm:$0xff] }
 0x150   :  { %v1134_v33 = vadd.f32 %v3239_v11, %v1099_v10  ;;  %v1133_v42 = vadd.f32 %v2849_v24, %v1098_v31  ;;  %v1243_v29 = vmul.f32 %v3215_v40, %v1240_v22  ;;  %v998_v20 = vadd.f32 %v3240_v19, %v963_v49 }
 0x151   :  { %v997_v26 = vadd.f32 %v3241_v30, %v962_v60  ;;  %v1270_v36 = vadd.f32 %v2948_v39, %v1236_v57  ;;  %v1269_v6 = vadd.f32 %v2951_v45, %v1235_v63  ;;  %v1238_v5 = vadd.f32 %v2939_v62, %v1172_v46  ;;  %v3246_v57 = vld [vmem:[#allocation16_spill] sm:$0xff] }
 0x152   :  { %v1237_v44 = vadd.f32 %v2986_v34, %v1171_v28  ;;  %v1196_v38 = vadd.f32 %v2979_v2, %v1134_v33  ;;  %v1195_v24 = vadd.f32 %v2981_v8, %v1133_v42  ;;  %v1109_v22 = vadd.f32 %v2857_v41, %v1074_v53  ;;  %v3248_v28 = vld [vmem:[#allocation62_spill] sm:$0xff]  ;;  %v3249_v33 = vld [vmem:[#allocation11_spill] sm:$0xff] }
 0x153   :  { %v3049_v55 = vpop.permute.xlu1 %1215  ;;  %v3051_v27 = vpop.permute.xlu0 %1213  ;;  %v1108_v0 = vadd.f32 %v2860_v4, %v1073_v15  ;;  %v1136_v3 = vadd.f32 %v3242_v52, %v1101_v59  ;;  %v1135_v56 = vadd.f32 %v2865_v50, %v1100_v13  ;;  %v1076_v45 = vadd.f32 %v2873_v48, %v998_v20  ;;  %v3243_v48 = vld [vmem:[#allocation17_spill] sm:$0xff] }
 0x154   :  { %v1075_v62 = vadd.f32 %v2875_v18, %v997_v26  ;;  %v1250_v8 = vstv %s3037_s0  ;;  %v1278_v41 = vmul.f32 %v2962_v9, %v3019_v32  ;;  %v1246_v4 = vadd.f32 %v1242_v7, %v1196_v38  ;;  %v3244_v18 = vld [vmem:[#allocation61_spill] sm:$0xff]  ;;  %v3247_v7 = vld [vmem:[#allocation60_spill] sm:$0xff] }
 0x155   :  { %v1198_v2 = vadd.f32 %v1190_v61, %v1136_v3  ;;  %v1197_v31 = vadd.f32 %v1188_v35, %v1135_v56  ;;  %v1245_v43 = vadd.f32 %v1241_v47, %v1195_v24  ;;  %v1272_v50 = vadd.f32 %v2989_v58, %v1238_v5  ;;  %v3250_v26 = vld [vmem:[#allocation12_spill] sm:$0xff] }
 0x156   :  { %v1271_v51 = vadd.f32 %v3243_v48, %v1237_v44  ;;  %v1144_v49 = vadd.f32 %v3244_v18, %v1109_v22  ;;  %v1143_v60 = vadd.f32 %v3245_v21, %v1108_v0  ;;  %v1277_v63 = vmul.f32 %v3246_v57, %v3019_v32  ;;  %v3252_v44 = vld [vmem:[#allocation65_spill] sm:$0xff] }
 0x157   :  { %v1306_v39 = vpop.permute.xlu1 %1305  ;;  %v1304_v10 = vpop.permute.xlu0 %1303  ;;  %v1284_v46 = vstv %s3053_s9  ;;  %v1111_v47 = vadd.f32 %v3247_v7, %v1076_v45  ;;  %v1110_v59 = vadd.f32 %v3248_v28, %v1075_v62  ;;  %v1248_v58 = vadd.f32 %v3016_v12, %v1198_v2 }
 0x158   :  { %v1316_v1 = vadd.f32 %v1306_v39, %v1270_v36  ;;  %v1315_v34 = vadd.f32 %v1304_v10, %v1269_v6  ;;  %v1247_v15 = vadd.f32 %v1243_v29, %v1197_v31  ;;  %v1252_v11 = vmul.f32 %v2366_v17, %v1250_v8  ;;  %v3251_v29 = vld [vmem:[#allocation64_spill] sm:$0xff] }
 0x159   :  { %v1251_v42 = vmul.f32 %v3249_v33, %v1250_v8  ;;  %v1222_v19 = vadd.f32 %v3025_v14, %v1144_v49  ;;  %v1221_v20 = vadd.f32 %v3027_v16, %v1143_v60  ;;  %v1280_v32 = vadd.f32 %v1276_v25, %v1246_v4 }
 0x15a   :  { %1373 = vst.msk [vmem:[#allocation7 + $0x8] sm:$0xff] %vm1371_vm0, %v1316_v1  ;;  %1372 = vst.msk [vmem:[#allocation7] sm:$0xff] %vm1371_vm0, %v1315_v34  ;;  %v1279_v30 = vadd.f32 %v1275_v37, %v1245_v43  ;;  %v1254_v36 = vmul.f32 %v3250_v26, %v1250_v8  ;;  %v1286_v12 = vmul.f32 %v2922_v23, %v1284_v46 }
 0x15b   :  { %v1310_v61 = vpop.permute.xlu1 %1309  ;;  %v1308_v35 = vpop.permute.xlu0 %1307  ;;  %v1146_v17 = vadd.f32 %v3251_v29, %v1111_v47  ;;  %v1145_v38 = vadd.f32 %v3252_v44, %v1110_v59  ;;  %v1253_v16 = vmul.f32 %v3215_v40, %v1250_v8  ;;  %v1282_v22 = vadd.f32 %v1278_v41, %v1248_v58 }
 0x15c   :  { %v1318_v13 = vadd.f32 %v1310_v61, %v1272_v50  ;;  %v1317_v53 = vadd.f32 %v1308_v35, %v1271_v51  ;;  %v1281_v0 = vadd.f32 %v1277_v63, %v1247_v15  ;;  %v1285_v52 = vmul.f32 %v2927_v54, %v1284_v46 }
 0x15d   :  { %v1256_v25 = vadd.f32 %v1252_v11, %v1222_v19  ;;  %v1255_v37 = vadd.f32 %v1251_v42, %v1221_v20  ;;  %v1224_v3 = vadd.f32 %v3049_v55, %v1146_v17  ;;  %v1223_v56 = vadd.f32 %v3051_v27, %v1145_v38 }
 0x15e   :  { %1375 = vst.msk [vmem:[#allocation7 + $0x18] sm:$0xff] %vm1371_vm0, %v1318_v13  ;;  %1374 = vst.msk [vmem:[#allocation7 + $0x10] sm:$0xff] %vm1371_vm0, %v1317_v53  ;;  %v1288_v40 = vmul.f32 %v2962_v9, %v1284_v46  ;;  %v1287_v62 = vmul.f32 %v3246_v57, %v1284_v46 }
 0x15f   :  { %v1332_v6 = vpop.permute.xlu1 %1331  ;;  %v1330_v5 = vpop.permute.xlu0 %1329  ;;  %v1258_v1 = vadd.f32 %v1254_v36, %v1224_v3  ;;  %v1257_v54 = vadd.f32 %v1253_v16, %v1223_v56  ;;  %v1290_v55 = vadd.f32 %v1286_v12, %v1256_v25  ;;  %v1289_v27 = vadd.f32 %v1285_v52, %v1255_v37 }
 0x160   :  { %v1342_v24 = vadd.f32 %v1332_v6, %v1280_v32  ;;  %v1341_v14 = vadd.f32 %v1330_v5, %v1279_v30 }
 0x161   :  { %v1292_v9 = vadd.f32 %v1288_v40, %v1258_v1  ;;  %v1291_v41 = vadd.f32 %v1287_v62, %v1257_v54 }
 0x162   :  { %1378 = vst.msk [vmem:[#allocation7 + $0x28] sm:$0xff] %vm1371_vm0, %v1342_v24  ;;  %1377 = vst.msk [vmem:[#allocation7 + $0x20] sm:$0xff] %vm1371_vm0, %v1341_v14 }
 0x163   :  { %v1336_v23 = vpop.permute.xlu1 %1335  ;;  %v1334_v39 = vpop.permute.xlu0 %1333 }
 0x164   :  { %v1344_v10 = vadd.f32 %v1336_v23, %v1282_v22  ;;  %v1343_v45 = vadd.f32 %v1334_v39, %v1281_v0 }
 0x166   :  { %1380 = vst.msk [vmem:[#allocation7 + $0x38] sm:$0xff] %vm1371_vm0, %v1344_v10  ;;  %1379 = vst.msk [vmem:[#allocation7 + $0x30] sm:$0xff] %vm1371_vm0, %v1343_v45 }
 0x167   :  { %v1358_v34 = vpop.permute.xlu1 %1357  ;;  %v1356_v2 = vpop.permute.xlu0 %1355 }
 0x168   :  { %v1368_v31 = vadd.f32 %v1358_v34, %v1290_v55  ;;  %v1367_v8 = vadd.f32 %v1356_v2, %v1289_v27 }
 0x16a   :  { %1383 = vst.msk [vmem:[#allocation7 + $0x48] sm:$0xff] %vm1371_vm0, %v1368_v31  ;;  %1382 = vst.msk [vmem:[#allocation7 + $0x40] sm:$0xff] %vm1371_vm0, %v1367_v8 }
 0x16b   :  { %v1362_v4 = vpop.permute.xlu1 %1361  ;;  %v1360_v43 = vpop.permute.xlu0 %1359 }
 0x16c   :  { %v1370_v50 = vadd.f32 %v1362_v4, %v1292_v9  ;;  %v1369_v48 = vadd.f32 %v1360_v43, %v1291_v41 }
 0x16e   :  { %1385 = vst.msk [vmem:[#allocation7 + $0x58] sm:$0xff] %vm1371_vm0, %v1370_v50  ;;  %1384 = vst.msk [vmem:[#allocation7 + $0x50] sm:$0xff] %vm1371_vm0, %v1369_v48 }
 0x16f   :  { %1599 = shalt.err (!%p1596_p0)
}
 0x170   :  { %s1600_s15 = scalar_lea.hbm %s3126_s3, 1536 }
 0x171   :  { %p1601_p1 = scmp.ne.s32.totalorder %s3126_s3, %s1600_s15  ;;  %p1604_p2 = scmp.lt.u32.totalorder %s1600_s15, %s3126_s3 }
 0x173   :  { %p1606_p3 = pnand %p1604_p2, %p1601_p1 }
 0x175   :  { %1609 = shalt.err (!%p1606_p3)
}
 0x176   :  { %s1620_s20 = smov 128   ;;  %s1621_s1 = smov 8  }
 0x177   :  { %1397 = dma.vmem_to_hbm [thread:$0]  %s1392_s11, 1536, %s3126_s3, [#allocation3], %s1620_s20, %s1620_s20, %s1621_s1  }
 0x178   :  { %1614 = dma.done.wait [#allocation3], 1536  }
 0x179   :  { %1615 = vsyncadd [#allocation3], 4294965760 }
 0x17a   :  { %1401 = vsyncpa [#allocation3], 1 }
 0x17b   :  { %1402 = vsyncpa [#allocation4], 1 }
 0x17c   :  { %1403 = vsyncpa [#allocation6], 1 }

</bundles_post_ra>
